<compile_context>
chip_gen: v6e
topology: v6e:2x2x1
jax: 0.10.0
libtpu: 0.0.40
codegen_flags: <defaults>
</compile_context>

<pallas_src>
import jax
import jax.numpy as jnp
from jax.experimental import pallas as pl
from jax.experimental.pallas import tpu as pltpu

EPS = 1e-5
NEG_SLOPE = 0.2
TM4_MAX = 2048            # packed rows per streamed tile (= 8192 logical rows)


def _round_up(x, m):
    return ((x + m - 1) // m) * m


def _vmem_capacity_bytes():
    try:
        return int(getattr(pltpu.get_tpu_info(), "vmem_capacity_bytes",
                           128 << 20))
    except Exception:
        return 128 << 20


# ---------------------------------------------------------------------------
# Parameter packing: 4-way row packing, groups at lane stride 32.
# ---------------------------------------------------------------------------
def _pack_params(params):
    (w1, b1, g1, be1, w2, b2, g2, be2, w3, b3, g3, be3,
     w4, b4, g4, be4, w5, b5) = [jnp.asarray(p, jnp.float32) for p in params]

    def bd(w, row_stride, rows):
        """Block-diagonal 4x replication; group g at [row_stride*g, 32*g]."""
        fin, fout = w.shape
        m = jnp.zeros((rows, 128), jnp.float32)
        for g in range(4):
            m = m.at[row_stride * g:row_stride * g + fin,
                     32 * g:32 * g + fout].set(w)
        return m

    w1b = bd(w1, 64, 256)            # (64->32) x4: (256, 128)
    w2b = bd(w2, 32, 128)            # (32->16) x4
    w3b = bd(w3, 32, 128)            # (16->16) x4
    w4b = bd(w4, 32, 128)            # (16-> 8) x4
    w5b = jnp.zeros((128, 128), jnp.float32)   # head: group g output -> lane g
    for g in range(4):
        w5b = w5b.at[32 * g:32 * g + 8, g:g + 1].set(w5)

    # Fold matrix: F[i, j] = 1 iff i % 32 == j % 32.  s @ F both sums the 4
    # packed row-groups per feature and broadcasts the result back to every
    # group's lanes (zero gap lanes stay zero).
    ii = jnp.arange(128)[:, None]
    jj = jnp.arange(128)[None, :]
    fold = ((ii % 32) == (jj % 32)).astype(jnp.float32)

    w_all = jnp.concatenate([w1b, w2b, w3b, w4b, w5b, fold], axis=0)  # (896,128)

    def pv(v, width):
        out = jnp.zeros((1, 128), jnp.float32)
        for g in range(4):
            out = out.at[:, 32 * g:32 * g + width].set(v)
        return out

    head_bias = jnp.zeros((1, 128), jnp.float32).at[:, 0:4].set(b5[0, 0])
    vec_all = jnp.concatenate(
        [pv(b1, 32), pv(g1, 32), pv(be1, 32),
         pv(b2, 16), pv(g2, 16), pv(be2, 16),
         pv(b3, 16), pv(g3, 16), pv(be3, 16),
         pv(b4, 8), pv(g4, 8), pv(be4, 8),
         head_bias,
         jnp.zeros((3, 128), jnp.float32)], axis=0)                   # (16,128)
    return w_all, vec_all


# ---------------------------------------------------------------------------
# Kernel
# ---------------------------------------------------------------------------
def _build_kernel(n, tm4, num_tiles, ragged):
    """n: true logical batch; tm4: packed rows per tile; ragged: statically
    known flag for whether padded logical rows exist."""

    def leaky(v):
        return jnp.where(v > 0, v, NEG_SLOPE * v)

    def kernel(x_ref, w_ref, v_ref, o_ref, act_ref, s_ref, ss_ref):
        i = pl.program_id(0)

        @pl.when(i == 0)
        def _init():
            s_ref[...] = jnp.zeros_like(s_ref)
            ss_ref[...] = jnp.zeros_like(ss_ref)

        def valid_mask(row_start):
            # logical row of (packed row p, lane l) = 4*(row_start+p) + l//32
            rows = jax.lax.broadcasted_iota(jnp.int32, (tm4, 128), 0)
            grp = jax.lax.broadcasted_iota(jnp.int32, (tm4, 128), 1) // 32
            return (4 * (row_start + rows) + grp) < n

        # ---------------- streamed phase: layer-1 pre-activation ------------
        xt = x_ref[...].astype(jnp.float32)                       # (tm4, 256)
        y1 = jnp.dot(xt, w_ref[0:256, :],
                     preferred_element_type=jnp.float32) + v_ref[0:1, :]

        def commit(y):
            s_ref[0:1, :] += jnp.sum(y, axis=0, keepdims=True)
            ss_ref[0:1, :] += jnp.sum(y * y, axis=0, keepdims=True)
            act_ref[pl.ds(pl.multiple_of(i * tm4, tm4), tm4), :] = y

        if ragged:
            @pl.when(i == num_tiles - 1)
            def _commit_last():
                commit(jnp.where(valid_mask(i * tm4), y1, 0.0))

            @pl.when(i < num_tiles - 1)
            def _commit_full():
                commit(y1)
        else:
            commit(y1)

        # ---------------- finalize: BN + layers 2..5, chunked ---------------
        @pl.when(i == num_tiles - 1)
        def _finalize():
            inv_n = jnp.float32(1.0 / n)
            fold_mat = w_ref[768:896, :]

            def bn_coeffs(stat_row, g_row, be_row):
                s = jnp.dot(s_ref[stat_row:stat_row + 1, :], fold_mat,
                            preferred_element_type=jnp.float32)
                ss = jnp.dot(ss_ref[stat_row:stat_row + 1, :], fold_mat,
                             preferred_element_type=jnp.float32)
                mean = s * inv_n
                # One-pass variance, clamped at 0 against f32 cancellation.
                var = jnp.maximum(ss * inv_n - mean * mean, 0.0)
                scale = v_ref[g_row:g_row + 1, :] * jax.lax.rsqrt(var + EPS)
                shift = v_ref[be_row:be_row + 1, :] - mean * scale
                return scale, shift

            def layer_sweep(stat_row, g_row, be_row, w_lo, b_row, next_row):
                scale, shift = bn_coeffs(stat_row, g_row, be_row)
                w_next = w_ref[w_lo:w_lo + 128, :]
                b_next = v_ref[b_row:b_row + 1, :]

                def body(c, _):
                    start = pl.multiple_of(c * tm4, tm4)
                    h = leaky(act_ref[pl.ds(start, tm4), :] * scale + shift)
                    y = jnp.dot(h, w_next,
                                preferred_element_type=jnp.float32) + b_next
                    ys = jnp.where(valid_mask(start), y, 0.0) if ragged else y
                    s_ref[next_row:next_row + 1, :] += jnp.sum(
                        ys, axis=0, keepdims=True)
                    ss_ref[next_row:next_row + 1, :] += jnp.sum(
                        ys * ys, axis=0, keepdims=True)
                    act_ref[pl.ds(start, tm4), :] = y
                    return 0

                jax.lax.fori_loop(0, num_tiles, body, 0)

            # vec rows: L1 b/g/be = 0/1/2, L2 = 3/4/5, L3 = 6/7/8, L4 = 9/10/11,
            # head bias = 12.  Weight slab rows: W2@256, W3@384, W4@512, W5@640.
            layer_sweep(0, 1, 2, 256, 3, 1)   # h1 -> y2, stats row 1
            layer_sweep(1, 4, 5, 384, 6, 2)   # h2 -> y3, stats row 2
            layer_sweep(2, 7, 8, 512, 9, 3)   # h3 -> y4, stats row 3

            scale4, shift4 = bn_coeffs(3, 10, 11)
            w5 = w_ref[640:768, :]
            b5 = v_ref[12:13, :]

            def head_body(c, _):
                start = pl.multiple_of(c * tm4, tm4)
                h = leaky(act_ref[pl.ds(start, tm4), :] * scale4 + shift4)
                z = jnp.dot(h, w5, preferred_element_type=jnp.float32) + b5
                # Numerically stable sigmoid with exact reciprocal (epilogue).
                ez = jnp.exp(-jnp.abs(z))
                sig = jnp.where(z >= 0, 1.0, ez) / (1.0 + ez)
                o_ref[pl.ds(start, tm4), :] = sig[:, 0:4]
                return 0

            jax.lax.fori_loop(0, num_tiles, head_body, 0)

    return kernel


# ---------------------------------------------------------------------------
# Wrapper
# ---------------------------------------------------------------------------
def discriminator2d_forward(x, params):
    """x: anything whose total size is a multiple of 64 (PyTorch view(-1, 64)).

    Returns a (N, 1) float32 array of probabilities, matching the PyTorch
    module evaluated with fresh (training-mode) BatchNorm statistics.
    """
    x2d = jnp.asarray(x).reshape(-1, 64)
    n = x2d.shape[0]
    n4 = -(-n // 4)                              # packed rows (4 logical each)
    if 4 * n4 != n:
        x2d = jnp.pad(x2d, ((0, 4 * n4 - n), (0, 0)))
    xp = x2d.reshape(n4, 256)                    # lane-dense packed input

    tm4 = min(TM4_MAX, _round_up(n4, 8))
    num_tiles = pl.cdiv(n4, tm4)
    n_pad4 = num_tiles * tm4
    ragged = (4 * n_pad4 != n)

    w_all, vec_all = _pack_params(params)

    # --- VMEM budget with lane padding accounted for ------------------------
    cap = _vmem_capacity_bytes()
    resident = 2 * n_pad4 * 128 * 4              # act scratch + padded out block
    stream = 2 * tm4 * 256 * xp.dtype.itemsize   # double-buffered input tile
    param_b = 2 * int(w_all.size + vec_all.size) * 4
    finalize_tmp = 6 * tm4 * 128 * 4             # per-chunk temporaries
    need = resident + stream + param_b + finalize_tmp + (4 << 20)
    if need > cap:
        # TODO(synk): a two-pass / eval-mode BatchNorm variant (or a
        # transposed, lane-dense output slab) would lift this batch limit.
        raise ValueError(
            f"batch of {n} rows needs ~{need >> 20} MiB VMEM "
            f"(~256 B/row resident) but this TPU core has {cap >> 20} MiB")
    vmem_limit = int(min(max(need, min(32 << 20, cap)), cap))

    kernel = _build_kernel(n, tm4, num_tiles, ragged)

    out = pl.pallas_call(
        kernel,
        out_shape=jax.ShapeDtypeStruct((n_pad4, 4), jnp.float32),
        grid_spec=pltpu.PrefetchScalarGridSpec(
            num_scalar_prefetch=0,
            grid=(num_tiles,),
            in_specs=[
                pl.BlockSpec((tm4, 256), lambda i: (i, 0)),     # streamed input
                pl.BlockSpec(w_all.shape, lambda i: (0, 0)),    # weight slab
                pl.BlockSpec(vec_all.shape, lambda i: (0, 0)),  # bias/gamma/beta
            ],
            out_specs=pl.BlockSpec((n_pad4, 4), lambda i: (0, 0)),
            scratch_shapes=[
                pltpu.VMEM((n_pad4, 128), jnp.float32),  # resident packed pre-acts
                pltpu.VMEM((4, 128), jnp.float32),       # per-layer running sums
                pltpu.VMEM((4, 128), jnp.float32),       # per-layer sum of squares
            ],
        ),
        # TODO(synk): on v7x, split the row axis across both TensorCores
        # (core_map + CMEM reduction of the (4,128) BN stats); kept single-core
        # "arbitrary" here for exact, simple training-mode BN.
        compiler_params=pltpu.CompilerParams(
            dimension_semantics=("arbitrary",),
            vmem_limit_bytes=vmem_limit,
        ),
    )(xp, w_all, vec_all)

    return out.reshape(-1, 1)[:n]


# ---------------------------------------------------------------------------
# Synthetic parameters + pure-JAX reference
# ---------------------------------------------------------------------------
def make_params(key):
    """Linear weights stored as (in, out); biases / BN gamma / beta as (1, out)."""
    dims = [(64, 32), (32, 16), (16, 16), (16, 8), (8, 1)]
    params = []
    keys = jax.random.split(key, len(dims) * 2)
    for idx, (fin, fout) in enumerate(dims):
        bound = 1.0 / float(fin) ** 0.5
        w = jax.random.uniform(keys[2 * idx], (fin, fout), jnp.float32,
                               -bound, bound)
        b = jax.random.uniform(keys[2 * idx + 1], (1, fout), jnp.float32,
                               -bound, bound)
        params.append(w)
        params.append(b)
        if fout != 1:  # every layer except the head is followed by BatchNorm1d
            params.append(jnp.ones((1, fout), jnp.float32))    # gamma
            params.append(jnp.zeros((1, fout), jnp.float32))   # beta
    return params


def _reference_forward(x, params):
    (w1, b1, g1, be1, w2, b2, g2, be2, w3, b3, g3, be3,
     w4, b4, g4, be4, w5, b5) = params
    h = jnp.asarray(x).reshape(-1, 64).astype(jnp.float32)

    def lin(h, w, b):
        return jnp.dot(h, w, precision=jax.lax.Precision.HIGHEST) + b

    def bn_lrelu(y, g, b):
        mean = jnp.mean(y, axis=0, keepdims=True)
        var = jnp.mean(jnp.square(y - mean), axis=0, keepdims=True)
        yn = (y - mean) / jnp.sqrt(var + EPS) * g + b
        return jnp.where(yn > 0, yn, NEG_SLOPE * yn)

    h = bn_lrelu(lin(h, w1, b1), g1, be1)
    h = bn_lrelu(lin(h, w2, b2), g2, be2)
    h = bn_lrelu(lin(h, w3, b3), g3, be3)
    h = bn_lrelu(lin(h, w4, b4), g4, be4)
    return jax.nn.sigmoid(lin(h, w5, b5))


if __name__ == "__main__":
    key = jax.random.PRNGKey(0)
    kx, kx2, kp = jax.random.split(key, 3)
    params = make_params(kp)

    # Case 1: NCHW-style input -> view(-1, 64) gives 32 rows (tile-aligned).
    x = jax.random.normal(kx, (2, 4, 16, 16), jnp.float32)
    out = jax.block_until_ready(discriminator2d_forward(x, params))
    assert out.shape == (32, 1), out.shape
    assert bool(jnp.all(jnp.isfinite(out)))
    assert bool(jnp.all((out >= 0.0) & (out <= 1.0)))
    ref = _reference_forward(x, params)
    err = float(jnp.max(jnp.abs(out - ref)))
    assert err < 2e-2, f"max |pallas - reference| = {err}"

    # Case 2: ragged batch (13 rows) exercises wrapper row padding + masking.
    x2 = jax.random.normal(kx2, (13, 64), jnp.float32)
    out2 = jax.block_until_ready(discriminator2d_forward(x2, params))
    ref2 = _reference_forward(x2, params)
    assert out2.shape == (13, 1), out2.shape
    err2 = float(jnp.max(jnp.abs(out2 - ref2)))
    assert err2 < 2e-2, f"max |pallas - reference| (ragged) = {err2}"

    print("KERNEL_OK")
</pallas_src>

<mosaic_0001>
module attributes {stable_mosaic.version = 11 : i64} {
  func.func @kernel(%arg0: i32, %arg1: memref<8x256xf32, #tpu.memory_space<vmem>>, %arg2: memref<896x128xf32, #tpu.memory_space<vmem>>, %arg3: memref<16x128xf32, #tpu.memory_space<vmem>>, %arg4: memref<8x4xf32, #tpu.memory_space<vmem>>, %arg5: memref<8x128xf32, #tpu.memory_space<vmem>>, %arg6: memref<4x128xf32, #tpu.memory_space<vmem>>, %arg7: memref<4x128xf32, #tpu.memory_space<vmem>>) attributes {dimension_semantics = [#tpu.dimension_semantics<arbitrary>], iteration_bounds = array<i64: 1>, scalar_prefetch = 0 : i64, scratch_operands = 3 : i64, tpu.core_type = #tpu.core_type<tc>, window_params = [{transform_indices = @transform_0, window_bounds = array<i64: 8, 256>}, {pipeline_mode = #tpu.pipeline_mode<synchronous>, transform_indices = @transform_1, window_bounds = array<i64: 896, 128>}, {pipeline_mode = #tpu.pipeline_mode<synchronous>, transform_indices = @transform_2, window_bounds = array<i64: 16, 128>}, {pipeline_mode = #tpu.pipeline_mode<synchronous>, transform_indices = @transform_3, window_bounds = array<i64: 8, 4>}]} {
    %c0_i32 = arith.constant 0 : i32
    %0 = arith.cmpi eq, %arg0, %c0_i32 : i32
    %1 = arith.extui %0 : i1 to i32
    %c0_i32_0 = arith.constant 0 : i32
    %2 = arith.cmpi ne, %1, %c0_i32_0 : i32
    scf.if %2 {
      %cst_19 = arith.constant 0.000000e+00 : f32
      %27 = vector.broadcast %cst_19 : f32 to vector<4x128xf32>
      %c0_20 = arith.constant 0 : index
      %c0_21 = arith.constant 0 : index
      %28 = vector.load %arg6[%c0_20, %c0_21] : memref<4x128xf32, #tpu.memory_space<vmem>>, vector<4x128xf32>
      tpu.vector_store %arg6[%c0_20, %c0_21], %27 {strides = array<i32>} : memref<4x128xf32, #tpu.memory_space<vmem>>, vector<4x128xf32>,
      %cst_22 = arith.constant 0.000000e+00 : f32
      %29 = vector.broadcast %cst_22 : f32 to vector<4x128xf32>
      %c0_23 = arith.constant 0 : index
      %c0_24 = arith.constant 0 : index
      %30 = vector.load %arg7[%c0_23, %c0_24] : memref<4x128xf32, #tpu.memory_space<vmem>>, vector<4x128xf32>
      tpu.vector_store %arg7[%c0_23, %c0_24], %29 {strides = array<i32>} : memref<4x128xf32, #tpu.memory_space<vmem>>, vector<4x128xf32>,
    } else {
    }
    %c0 = arith.constant 0 : index
    %c0_1 = arith.constant 0 : index
    %3 = vector.load %arg1[%c0, %c0_1] : memref<8x256xf32, #tpu.memory_space<vmem>>, vector<8x256xf32>
    %c0_2 = arith.constant 0 : index
    %c0_3 = arith.constant 0 : index
    %4 = vector.load %arg2[%c0_2, %c0_3] : memref<896x128xf32, #tpu.memory_space<vmem>>, vector<256x128xf32>
    %cst = arith.constant dense<0.000000e+00> : vector<8x128xf32>
    %5 = tpu.matmul %3, %4, %cst {dimension_numbers = #tpu.dot_dimension_numbers<[1], [0], [0], [1], [0, 0, 1, 1], [], []>} : vector<8x256xf32>, vector<256x128xf32>, vector<8x128xf32> -> vector<8x128xf32>
    %c0_4 = arith.constant 0 : index
    %c0_5 = arith.constant 0 : index
    %6 = vector.load %arg3[%c0_4, %c0_5] : memref<16x128xf32, #tpu.memory_space<vmem>>, vector<1x128xf32>
    %7 = vector.broadcast %6 : vector<1x128xf32> to vector<8x128xf32>
    %8 = arith.addf %5, %7 : vector<8x128xf32>
    %c0_6 = arith.constant 0 : index
    %c0_7 = arith.constant 0 : index
    %9 = vector.load %arg6[%c0_6, %c0_7] : memref<4x128xf32, #tpu.memory_space<vmem>>, vector<1x128xf32>
    %cst_8 = arith.constant dense<0.000000e+00> : vector<128xf32>
    %10 = vector.multi_reduction <add>, %8, %cst_8 [0] : vector<8x128xf32> to vector<128xf32>
    %11 = vector.shape_cast %10 : vector<128xf32> to vector<1x128xf32>
    %12 = arith.addf %9, %11 : vector<1x128xf32>
    %c0_9 = arith.constant 0 : index
    %c0_10 = arith.constant 0 : index
    %13 = vector.load %arg6[%c0_9, %c0_10] : memref<4x128xf32, #tpu.memory_space<vmem>>, vector<1x128xf32>
    tpu.vector_store %arg6[%c0_9, %c0_10], %12 {strides = array<i32>} : memref<4x128xf32, #tpu.memory_space<vmem>>, vector<1x128xf32>,
    %c0_11 = arith.constant 0 : index
    %c0_12 = arith.constant 0 : index
    %14 = vector.load %arg7[%c0_11, %c0_12] : memref<4x128xf32, #tpu.memory_space<vmem>>, vector<1x128xf32>
    %15 = arith.mulf %8, %8 : vector<8x128xf32>
    %cst_13 = arith.constant dense<0.000000e+00> : vector<128xf32>
    %16 = vector.multi_reduction <add>, %15, %cst_13 [0] : vector<8x128xf32> to vector<128xf32>
    %17 = vector.shape_cast %16 : vector<128xf32> to vector<1x128xf32>
    %18 = arith.addf %14, %17 : vector<1x128xf32>
    %c0_14 = arith.constant 0 : index
    %c0_15 = arith.constant 0 : index
    %19 = vector.load %arg7[%c0_14, %c0_15] : memref<4x128xf32, #tpu.memory_space<vmem>>, vector<1x128xf32>
    tpu.vector_store %arg7[%c0_14, %c0_15], %18 {strides = array<i32>} : memref<4x128xf32, #tpu.memory_space<vmem>>, vector<1x128xf32>,
    %c8_i32 = arith.constant 8 : i32
    %20 = arith.muli %arg0, %c8_i32 : i32
    %21 = tpu.assume_multiple %20, 8 : i32
    %22 = arith.index_cast %21 : i32 to index
    %c0_16 = arith.constant 0 : index
    %23 = vector.load %arg5[%22, %c0_16] : memref<8x128xf32, #tpu.memory_space<vmem>>, vector<8x128xf32>
    tpu.vector_store %arg5[%22, %c0_16], %8 {strides = array<i32>} : memref<8x128xf32, #tpu.memory_space<vmem>>, vector<8x128xf32>,
    %c0_i32_17 = arith.constant 0 : i32
    %24 = arith.cmpi eq, %arg0, %c0_i32_17 : i32
    %25 = arith.extui %24 : i1 to i32
    %c0_i32_18 = arith.constant 0 : i32
    %26 = arith.cmpi ne, %25, %c0_i32_18 : i32
    scf.if %26 {
      %c768 = arith.constant 768 : index
      %c0_19 = arith.constant 0 : index
      %27 = vector.load %arg2[%c768, %c0_19] : memref<896x128xf32, #tpu.memory_space<vmem>>, vector<128x128xf32>
      %c0_20 = arith.constant 0 : index
      %c0_21 = arith.constant 0 : index
      %28 = vector.load %arg6[%c0_20, %c0_21] : memref<4x128xf32, #tpu.memory_space<vmem>>, vector<1x128xf32>
      %cst_22 = arith.constant dense<0.000000e+00> : vector<1x128xf32>
      %29 = tpu.matmul %28, %27, %cst_22 {dimension_numbers = #tpu.dot_dimension_numbers<[1], [0], [0], [1], [0, 0, 1, 1], [], []>} : vector<1x128xf32>, vector<128x128xf32>, vector<1x128xf32> -> vector<1x128xf32>
      %c0_23 = arith.constant 0 : index
      %c0_24 = arith.constant 0 : index
      %30 = vector.load %arg7[%c0_23, %c0_24] : memref<4x128xf32, #tpu.memory_space<vmem>>, vector<1x128xf32>
      %cst_25 = arith.constant dense<0.000000e+00> : vector<1x128xf32>
      %31 = tpu.matmul %30, %27, %cst_25 {dimension_numbers = #tpu.dot_dimension_numbers<[1], [0], [0], [1], [0, 0, 1, 1], [], []>} : vector<1x128xf32>, vector<128x128xf32>, vector<1x128xf32> -> vector<1x128xf32>
      %cst_26 = arith.constant 3.125000e-02 : f32
      %32 = vector.broadcast %cst_26 : f32 to vector<1x128xf32>
      %33 = arith.mulf %29, %32 : vector<1x128xf32>
      %cst_27 = arith.constant 3.125000e-02 : f32
      %34 = vector.broadcast %cst_27 : f32 to vector<1x128xf32>
      %35 = arith.mulf %31, %34 : vector<1x128xf32>
      %36 = arith.mulf %33, %33 : vector<1x128xf32>
      %37 = arith.subf %35, %36 : vector<1x128xf32>
      %cst_28 = arith.constant 0.000000e+00 : f32
      %38 = vector.broadcast %cst_28 : f32 to vector<1x128xf32>
      %39 = arith.maximumf %37, %38 : vector<1x128xf32>
      %c1 = arith.constant 1 : index
      %c0_29 = arith.constant 0 : index
      %40 = vector.load %arg3[%c1, %c0_29] : memref<16x128xf32, #tpu.memory_space<vmem>>, vector<1x128xf32>
      %cst_30 = arith.constant 9.99999974E-6 : f32
      %41 = vector.broadcast %cst_30 : f32 to vector<1x128xf32>
      %42 = arith.addf %39, %41 : vector<1x128xf32>
      %43 = math.rsqrt %42 : vector<1x128xf32>
      %44 = arith.mulf %40, %43 : vector<1x128xf32>
      %c2 = arith.constant 2 : index
      %c0_31 = arith.constant 0 : index
      %45 = vector.load %arg3[%c2, %c0_31] : memref<16x128xf32, #tpu.memory_space<vmem>>, vector<1x128xf32>
      %46 = arith.mulf %33, %44 : vector<1x128xf32>
      %47 = arith.subf %45, %46 : vector<1x128xf32>
      %c256 = arith.constant 256 : index
      %c0_32 = arith.constant 0 : index
      %48 = vector.load %arg2[%c256, %c0_32] : memref<896x128xf32, #tpu.memory_space<vmem>>, vector<128x128xf32>
      %c3 = arith.constant 3 : index
      %c0_33 = arith.constant 0 : index
      %49 = vector.load %arg3[%c3, %c0_33] : memref<16x128xf32, #tpu.memory_space<vmem>>, vector<1x128xf32>
      %c0_i32_34 = arith.constant 0 : i32
      %c8_i32_35 = arith.constant 8 : i32
      %50 = arith.muli %c0_i32_34, %c8_i32_35 : i32
      %51 = tpu.assume_multiple %50, 8 : i32
      %52 = arith.index_cast %51 : i32 to index
      %c0_36 = arith.constant 0 : index
      %53 = vector.load %arg5[%52, %c0_36] : memref<8x128xf32, #tpu.memory_space<vmem>>, vector<8x128xf32>
      %54 = vector.broadcast %44 : vector<1x128xf32> to vector<8x128xf32>
      %55 = arith.mulf %53, %54 : vector<8x128xf32>
      %56 = vector.broadcast %47 : vector<1x128xf32> to vector<8x128xf32>
      %57 = arith.addf %55, %56 : vector<8x128xf32>
      %cst_37 = arith.constant 0.000000e+00 : f32
      %58 = vector.broadcast %cst_37 : f32 to vector<8x128xf32>
      %59 = arith.cmpf ogt, %57, %58 : vector<8x128xf32>
      %cst_38 = arith.constant 2.000000e-01 : f32
      %60 = vector.broadcast %cst_38 : f32 to vector<8x128xf32>
      %61 = arith.mulf %60, %57 : vector<8x128xf32>
      %62 = arith.select %59, %57, %61 : vector<8x128xi1>, vector<8x128xf32>
      %cst_39 = arith.constant dense<0.000000e+00> : vector<8x128xf32>
      %63 = tpu.matmul %62, %48, %cst_39 {dimension_numbers = #tpu.dot_dimension_numbers<[1], [0], [0], [1], [0, 0, 1, 1], [], []>} : vector<8x128xf32>, vector<128x128xf32>, vector<8x128xf32> -> vector<8x128xf32>
      %64 = vector.broadcast %49 : vector<1x128xf32> to vector<8x128xf32>
      %65 = arith.addf %63, %64 : vector<8x128xf32>
      %c1_40 = arith.constant 1 : index
      %c0_41 = arith.constant 0 : index
      %66 = vector.load %arg6[%c1_40, %c0_41] : memref<4x128xf32, #tpu.memory_space<vmem>>, vector<1x128xf32>
      %cst_42 = arith.constant dense<0.000000e+00> : vector<128xf32>
      %67 = vector.multi_reduction <add>, %65, %cst_42 [0] : vector<8x128xf32> to vector<128xf32>
      %68 = vector.shape_cast %67 : vector<128xf32> to vector<1x128xf32>
      %69 = arith.addf %66, %68 : vector<1x128xf32>
      %c1_43 = arith.constant 1 : index
      %c0_44 = arith.constant 0 : index
      %70 = vector.load %arg6[%c1_43, %c0_44] : memref<4x128xf32, #tpu.memory_space<vmem>>, vector<1x128xf32>
      tpu.vector_store %arg6[%c1_43, %c0_44], %69 {strides = array<i32>} : memref<4x128xf32, #tpu.memory_space<vmem>>, vector<1x128xf32>,
      %c1_45 = arith.constant 1 : index
      %c0_46 = arith.constant 0 : index
      %71 = vector.load %arg7[%c1_45, %c0_46] : memref<4x128xf32, #tpu.memory_space<vmem>>, vector<1x128xf32>
      %72 = arith.mulf %65, %65 : vector<8x128xf32>
      %cst_47 = arith.constant dense<0.000000e+00> : vector<128xf32>
      %73 = vector.multi_reduction <add>, %72, %cst_47 [0] : vector<8x128xf32> to vector<128xf32>
      %74 = vector.shape_cast %73 : vector<128xf32> to vector<1x128xf32>
      %75 = arith.addf %71, %74 : vector<1x128xf32>
      %c1_48 = arith.constant 1 : index
      %c0_49 = arith.constant 0 : index
      %76 = vector.load %arg7[%c1_48, %c0_49] : memref<4x128xf32, #tpu.memory_space<vmem>>, vector<1x128xf32>
      tpu.vector_store %arg7[%c1_48, %c0_49], %75 {strides = array<i32>} : memref<4x128xf32, #tpu.memory_space<vmem>>, vector<1x128xf32>,
      %77 = arith.index_cast %51 : i32 to index
      %c0_50 = arith.constant 0 : index
      %78 = vector.load %arg5[%77, %c0_50] : memref<8x128xf32, #tpu.memory_space<vmem>>, vector<8x128xf32>
      tpu.vector_store %arg5[%77, %c0_50], %65 {strides = array<i32>} : memref<8x128xf32, #tpu.memory_space<vmem>>, vector<8x128xf32>,
      %c1_i32 = arith.constant 1 : i32
      %c1_51 = arith.constant 1 : index
      %c0_52 = arith.constant 0 : index
      %79 = vector.load %arg6[%c1_51, %c0_52] : memref<4x128xf32, #tpu.memory_space<vmem>>, vector<1x128xf32>
      %cst_53 = arith.constant dense<0.000000e+00> : vector<1x128xf32>
      %80 = tpu.matmul %79, %27, %cst_53 {dimension_numbers = #tpu.dot_dimension_numbers<[1], [0], [0], [1], [0, 0, 1, 1], [], []>} : vector<1x128xf32>, vector<128x128xf32>, vector<1x128xf32> -> vector<1x128xf32>
      %c1_54 = arith.constant 1 : index
      %c0_55 = arith.constant 0 : index
      %81 = vector.load %arg7[%c1_54, %c0_55] : memref<4x128xf32, #tpu.memory_space<vmem>>, vector<1x128xf32>
      %cst_56 = arith.constant dense<0.000000e+00> : vector<1x128xf32>
      %82 = tpu.matmul %81, %27, %cst_56 {dimension_numbers = #tpu.dot_dimension_numbers<[1], [0], [0], [1], [0, 0, 1, 1], [], []>} : vector<1x128xf32>, vector<128x128xf32>, vector<1x128xf32> -> vector<1x128xf32>
      %cst_57 = arith.constant 3.125000e-02 : f32
      %83 = vector.broadcast %cst_57 : f32 to vector<1x128xf32>
      %84 = arith.mulf %80, %83 : vector<1x128xf32>
      %cst_58 = arith.constant 3.125000e-02 : f32
      %85 = vector.broadcast %cst_58 : f32 to vector<1x128xf32>
      %86 = arith.mulf %82, %85 : vector<1x128xf32>
      %87 = arith.mulf %84, %84 : vector<1x128xf32>
      %88 = arith.subf %86, %87 : vector<1x128xf32>
      %cst_59 = arith.constant 0.000000e+00 : f32
      %89 = vector.broadcast %cst_59 : f32 to vector<1x128xf32>
      %90 = arith.maximumf %88, %89 : vector<1x128xf32>
      %c4 = arith.constant 4 : index
      %c0_60 = arith.constant 0 : index
      %91 = vector.load %arg3[%c4, %c0_60] : memref<16x128xf32, #tpu.memory_space<vmem>>, vector<1x128xf32>
      %cst_61 = arith.constant 9.99999974E-6 : f32
      %92 = vector.broadcast %cst_61 : f32 to vector<1x128xf32>
      %93 = arith.addf %90, %92 : vector<1x128xf32>
      %94 = math.rsqrt %93 : vector<1x128xf32>
      %95 = arith.mulf %91, %94 : vector<1x128xf32>
      %c5 = arith.constant 5 : index
      %c0_62 = arith.constant 0 : index
      %96 = vector.load %arg3[%c5, %c0_62] : memref<16x128xf32, #tpu.memory_space<vmem>>, vector<1x128xf32>
      %97 = arith.mulf %84, %95 : vector<1x128xf32>
      %98 = arith.subf %96, %97 : vector<1x128xf32>
      %c384 = arith.constant 384 : index
      %c0_63 = arith.constant 0 : index
      %99 = vector.load %arg2[%c384, %c0_63] : memref<896x128xf32, #tpu.memory_space<vmem>>, vector<128x128xf32>
      %c6 = arith.constant 6 : index
      %c0_64 = arith.constant 0 : index
      %100 = vector.load %arg3[%c6, %c0_64] : memref<16x128xf32, #tpu.memory_space<vmem>>, vector<1x128xf32>
      %c0_i32_65 = arith.constant 0 : i32
      %c8_i32_66 = arith.constant 8 : i32
      %101 = arith.muli %c0_i32_65, %c8_i32_66 : i32
      %102 = tpu.assume_multiple %101, 8 : i32
      %103 = arith.index_cast %102 : i32 to index
      %c0_67 = arith.constant 0 : index
      %104 = vector.load %arg5[%103, %c0_67] : memref<8x128xf32, #tpu.memory_space<vmem>>, vector<8x128xf32>
      %105 = vector.broadcast %95 : vector<1x128xf32> to vector<8x128xf32>
      %106 = arith.mulf %104, %105 : vector<8x128xf32>
      %107 = vector.broadcast %98 : vector<1x128xf32> to vector<8x128xf32>
      %108 = arith.addf %106, %107 : vector<8x128xf32>
      %cst_68 = arith.constant 0.000000e+00 : f32
      %109 = vector.broadcast %cst_68 : f32 to vector<8x128xf32>
      %110 = arith.cmpf ogt, %108, %109 : vector<8x128xf32>
      %cst_69 = arith.constant 2.000000e-01 : f32
      %111 = vector.broadcast %cst_69 : f32 to vector<8x128xf32>
      %112 = arith.mulf %111, %108 : vector<8x128xf32>
      %113 = arith.select %110, %108, %112 : vector<8x128xi1>, vector<8x128xf32>
      %cst_70 = arith.constant dense<0.000000e+00> : vector<8x128xf32>
      %114 = tpu.matmul %113, %99, %cst_70 {dimension_numbers = #tpu.dot_dimension_numbers<[1], [0], [0], [1], [0, 0, 1, 1], [], []>} : vector<8x128xf32>, vector<128x128xf32>, vector<8x128xf32> -> vector<8x128xf32>
      %115 = vector.broadcast %100 : vector<1x128xf32> to vector<8x128xf32>
      %116 = arith.addf %114, %115 : vector<8x128xf32>
      %c2_71 = arith.constant 2 : index
      %c0_72 = arith.constant 0 : index
      %117 = vector.load %arg6[%c2_71, %c0_72] : memref<4x128xf32, #tpu.memory_space<vmem>>, vector<1x128xf32>
      %cst_73 = arith.constant dense<0.000000e+00> : vector<128xf32>
      %118 = vector.multi_reduction <add>, %116, %cst_73 [0] : vector<8x128xf32> to vector<128xf32>
      %119 = vector.shape_cast %118 : vector<128xf32> to vector<1x128xf32>
      %120 = arith.addf %117, %119 : vector<1x128xf32>
      %c2_74 = arith.constant 2 : index
      %c0_75 = arith.constant 0 : index
      %121 = vector.load %arg6[%c2_74, %c0_75] : memref<4x128xf32, #tpu.memory_space<vmem>>, vector<1x128xf32>
      tpu.vector_store %arg6[%c2_74, %c0_75], %120 {strides = array<i32>} : memref<4x128xf32, #tpu.memory_space<vmem>>, vector<1x128xf32>,
      %c2_76 = arith.constant 2 : index
      %c0_77 = arith.constant 0 : index
      %122 = vector.load %arg7[%c2_76, %c0_77] : memref<4x128xf32, #tpu.memory_space<vmem>>, vector<1x128xf32>
      %123 = arith.mulf %116, %116 : vector<8x128xf32>
      %cst_78 = arith.constant dense<0.000000e+00> : vector<128xf32>
      %124 = vector.multi_reduction <add>, %123, %cst_78 [0] : vector<8x128xf32> to vector<128xf32>
      %125 = vector.shape_cast %124 : vector<128xf32> to vector<1x128xf32>
      %126 = arith.addf %122, %125 : vector<1x128xf32>
      %c2_79 = arith.constant 2 : index
      %c0_80 = arith.constant 0 : index
      %127 = vector.load %arg7[%c2_79, %c0_80] : memref<4x128xf32, #tpu.memory_space<vmem>>, vector<1x128xf32>
      tpu.vector_store %arg7[%c2_79, %c0_80], %126 {strides = array<i32>} : memref<4x128xf32, #tpu.memory_space<vmem>>, vector<1x128xf32>,
      %128 = arith.index_cast %102 : i32 to index
      %c0_81 = arith.constant 0 : index
      %129 = vector.load %arg5[%128, %c0_81] : memref<8x128xf32, #tpu.memory_space<vmem>>, vector<8x128xf32>
      tpu.vector_store %arg5[%128, %c0_81], %116 {strides = array<i32>} : memref<8x128xf32, #tpu.memory_space<vmem>>, vector<8x128xf32>,
      %c1_i32_82 = arith.constant 1 : i32
      %c2_83 = arith.constant 2 : index
      %c0_84 = arith.constant 0 : index
      %130 = vector.load %arg6[%c2_83, %c0_84] : memref<4x128xf32, #tpu.memory_space<vmem>>, vector<1x128xf32>
      %cst_85 = arith.constant dense<0.000000e+00> : vector<1x128xf32>
      %131 = tpu.matmul %130, %27, %cst_85 {dimension_numbers = #tpu.dot_dimension_numbers<[1], [0], [0], [1], [0, 0, 1, 1], [], []>} : vector<1x128xf32>, vector<128x128xf32>, vector<1x128xf32> -> vector<1x128xf32>
      %c2_86 = arith.constant 2 : index
      %c0_87 = arith.constant 0 : index
      %132 = vector.load %arg7[%c2_86, %c0_87] : memref<4x128xf32, #tpu.memory_space<vmem>>, vector<1x128xf32>
      %cst_88 = arith.constant dense<0.000000e+00> : vector<1x128xf32>
      %133 = tpu.matmul %132, %27, %cst_88 {dimension_numbers = #tpu.dot_dimension_numbers<[1], [0], [0], [1], [0, 0, 1, 1], [], []>} : vector<1x128xf32>, vector<128x128xf32>, vector<1x128xf32> -> vector<1x128xf32>
      %cst_89 = arith.constant 3.125000e-02 : f32
      %134 = vector.broadcast %cst_89 : f32 to vector<1x128xf32>
      %135 = arith.mulf %131, %134 : vector<1x128xf32>
      %cst_90 = arith.constant 3.125000e-02 : f32
      %136 = vector.broadcast %cst_90 : f32 to vector<1x128xf32>
      %137 = arith.mulf %133, %136 : vector<1x128xf32>
      %138 = arith.mulf %135, %135 : vector<1x128xf32>
      %139 = arith.subf %137, %138 : vector<1x128xf32>
      %cst_91 = arith.constant 0.000000e+00 : f32
      %140 = vector.broadcast %cst_91 : f32 to vector<1x128xf32>
      %141 = arith.maximumf %139, %140 : vector<1x128xf32>
      %c7 = arith.constant 7 : index
      %c0_92 = arith.constant 0 : index
      %142 = vector.load %arg3[%c7, %c0_92] : memref<16x128xf32, #tpu.memory_space<vmem>>, vector<1x128xf32>
      %cst_93 = arith.constant 9.99999974E-6 : f32
      %143 = vector.broadcast %cst_93 : f32 to vector<1x128xf32>
      %144 = arith.addf %141, %143 : vector<1x128xf32>
      %145 = math.rsqrt %144 : vector<1x128xf32>
      %146 = arith.mulf %142, %145 : vector<1x128xf32>
      %c8 = arith.constant 8 : index
      %c0_94 = arith.constant 0 : index
      %147 = vector.load %arg3[%c8, %c0_94] : memref<16x128xf32, #tpu.memory_space<vmem>>, vector<1x128xf32>
      %148 = arith.mulf %135, %146 : vector<1x128xf32>
      %149 = arith.subf %147, %148 : vector<1x128xf32>
      %c512 = arith.constant 512 : index
      %c0_95 = arith.constant 0 : index
      %150 = vector.load %arg2[%c512, %c0_95] : memref<896x128xf32, #tpu.memory_space<vmem>>, vector<128x128xf32>
      %c9 = arith.constant 9 : index
      %c0_96 = arith.constant 0 : index
      %151 = vector.load %arg3[%c9, %c0_96] : memref<16x128xf32, #tpu.memory_space<vmem>>, vector<1x128xf32>
      %c0_i32_97 = arith.constant 0 : i32
      %c8_i32_98 = arith.constant 8 : i32
      %152 = arith.muli %c0_i32_97, %c8_i32_98 : i32
      %153 = tpu.assume_multiple %152, 8 : i32
      %154 = arith.index_cast %153 : i32 to index
      %c0_99 = arith.constant 0 : index
      %155 = vector.load %arg5[%154, %c0_99] : memref<8x128xf32, #tpu.memory_space<vmem>>, vector<8x128xf32>
      %156 = vector.broadcast %146 : vector<1x128xf32> to vector<8x128xf32>
      %157 = arith.mulf %155, %156 : vector<8x128xf32>
      %158 = vector.broadcast %149 : vector<1x128xf32> to vector<8x128xf32>
      %159 = arith.addf %157, %158 : vector<8x128xf32>
      %cst_100 = arith.constant 0.000000e+00 : f32
      %160 = vector.broadcast %cst_100 : f32 to vector<8x128xf32>
      %161 = arith.cmpf ogt, %159, %160 : vector<8x128xf32>
      %cst_101 = arith.constant 2.000000e-01 : f32
      %162 = vector.broadcast %cst_101 : f32 to vector<8x128xf32>
      %163 = arith.mulf %162, %159 : vector<8x128xf32>
      %164 = arith.select %161, %159, %163 : vector<8x128xi1>, vector<8x128xf32>
      %cst_102 = arith.constant dense<0.000000e+00> : vector<8x128xf32>
      %165 = tpu.matmul %164, %150, %cst_102 {dimension_numbers = #tpu.dot_dimension_numbers<[1], [0], [0], [1], [0, 0, 1, 1], [], []>} : vector<8x128xf32>, vector<128x128xf32>, vector<8x128xf32> -> vector<8x128xf32>
      %166 = vector.broadcast %151 : vector<1x128xf32> to vector<8x128xf32>
      %167 = arith.addf %165, %166 : vector<8x128xf32>
      %c3_103 = arith.constant 3 : index
      %c0_104 = arith.constant 0 : index
      %168 = vector.load %arg6[%c3_103, %c0_104] : memref<4x128xf32, #tpu.memory_space<vmem>>, vector<1x128xf32>
      %cst_105 = arith.constant dense<0.000000e+00> : vector<128xf32>
      %169 = vector.multi_reduction <add>, %167, %cst_105 [0] : vector<8x128xf32> to vector<128xf32>
      %170 = vector.shape_cast %169 : vector<128xf32> to vector<1x128xf32>
      %171 = arith.addf %168, %170 : vector<1x128xf32>
      %c3_106 = arith.constant 3 : index
      %c0_107 = arith.constant 0 : index
      %172 = vector.load %arg6[%c3_106, %c0_107] : memref<4x128xf32, #tpu.memory_space<vmem>>, vector<1x128xf32>
      tpu.vector_store %arg6[%c3_106, %c0_107], %171 {strides = array<i32>} : memref<4x128xf32, #tpu.memory_space<vmem>>, vector<1x128xf32>,
      %c3_108 = arith.constant 3 : index
      %c0_109 = arith.constant 0 : index
      %173 = vector.load %arg7[%c3_108, %c0_109] : memref<4x128xf32, #tpu.memory_space<vmem>>, vector<1x128xf32>
      %174 = arith.mulf %167, %167 : vector<8x128xf32>
      %cst_110 = arith.constant dense<0.000000e+00> : vector<128xf32>
      %175 = vector.multi_reduction <add>, %174, %cst_110 [0] : vector<8x128xf32> to vector<128xf32>
      %176 = vector.shape_cast %175 : vector<128xf32> to vector<1x128xf32>
      %177 = arith.addf %173, %176 : vector<1x128xf32>
      %c3_111 = arith.constant 3 : index
      %c0_112 = arith.constant 0 : index
      %178 = vector.load %arg7[%c3_111, %c0_112] : memref<4x128xf32, #tpu.memory_space<vmem>>, vector<1x128xf32>
      tpu.vector_store %arg7[%c3_111, %c0_112], %177 {strides = array<i32>} : memref<4x128xf32, #tpu.memory_space<vmem>>, vector<1x128xf32>,
      %179 = arith.index_cast %153 : i32 to index
      %c0_113 = arith.constant 0 : index
      %180 = vector.load %arg5[%179, %c0_113] : memref<8x128xf32, #tpu.memory_space<vmem>>, vector<8x128xf32>
      tpu.vector_store %arg5[%179, %c0_113], %167 {strides = array<i32>} : memref<8x128xf32, #tpu.memory_space<vmem>>, vector<8x128xf32>,
      %c1_i32_114 = arith.constant 1 : i32
      %c3_115 = arith.constant 3 : index
      %c0_116 = arith.constant 0 : index
      %181 = vector.load %arg6[%c3_115, %c0_116] : memref<4x128xf32, #tpu.memory_space<vmem>>, vector<1x128xf32>
      %cst_117 = arith.constant dense<0.000000e+00> : vector<1x128xf32>
      %182 = tpu.matmul %181, %27, %cst_117 {dimension_numbers = #tpu.dot_dimension_numbers<[1], [0], [0], [1], [0, 0, 1, 1], [], []>} : vector<1x128xf32>, vector<128x128xf32>, vector<1x128xf32> -> vector<1x128xf32>
      %c3_118 = arith.constant 3 : index
      %c0_119 = arith.constant 0 : index
      %183 = vector.load %arg7[%c3_118, %c0_119] : memref<4x128xf32, #tpu.memory_space<vmem>>, vector<1x128xf32>
      %cst_120 = arith.constant dense<0.000000e+00> : vector<1x128xf32>
      %184 = tpu.matmul %183, %27, %cst_120 {dimension_numbers = #tpu.dot_dimension_numbers<[1], [0], [0], [1], [0, 0, 1, 1], [], []>} : vector<1x128xf32>, vector<128x128xf32>, vector<1x128xf32> -> vector<1x128xf32>
      %cst_121 = arith.constant 3.125000e-02 : f32
      %185 = vector.broadcast %cst_121 : f32 to vector<1x128xf32>
      %186 = arith.mulf %182, %185 : vector<1x128xf32>
      %cst_122 = arith.constant 3.125000e-02 : f32
      %187 = vector.broadcast %cst_122 : f32 to vector<1x128xf32>
      %188 = arith.mulf %184, %187 : vector<1x128xf32>
      %189 = arith.mulf %186, %186 : vector<1x128xf32>
      %190 = arith.subf %188, %189 : vector<1x128xf32>
      %cst_123 = arith.constant 0.000000e+00 : f32
      %191 = vector.broadcast %cst_123 : f32 to vector<1x128xf32>
      %192 = arith.maximumf %190, %191 : vector<1x128xf32>
      %c10 = arith.constant 10 : index
      %c0_124 = arith.constant 0 : index
      %193 = vector.load %arg3[%c10, %c0_124] : memref<16x128xf32, #tpu.memory_space<vmem>>, vector<1x128xf32>
      %cst_125 = arith.constant 9.99999974E-6 : f32
      %194 = vector.broadcast %cst_125 : f32 to vector<1x128xf32>
      %195 = arith.addf %192, %194 : vector<1x128xf32>
      %196 = math.rsqrt %195 : vector<1x128xf32>
      %197 = arith.mulf %193, %196 : vector<1x128xf32>
      %c11 = arith.constant 11 : index
      %c0_126 = arith.constant 0 : index
      %198 = vector.load %arg3[%c11, %c0_126] : memref<16x128xf32, #tpu.memory_space<vmem>>, vector<1x128xf32>
      %199 = arith.mulf %186, %197 : vector<1x128xf32>
      %200 = arith.subf %198, %199 : vector<1x128xf32>
      %c640 = arith.constant 640 : index
      %c0_127 = arith.constant 0 : index
      %201 = vector.load %arg2[%c640, %c0_127] : memref<896x128xf32, #tpu.memory_space<vmem>>, vector<128x128xf32>
      %c12 = arith.constant 12 : index
      %c0_128 = arith.constant 0 : index
      %202 = vector.load %arg3[%c12, %c0_128] : memref<16x128xf32, #tpu.memory_space<vmem>>, vector<1x128xf32>
      %c0_i32_129 = arith.constant 0 : i32
      %c8_i32_130 = arith.constant 8 : i32
      %203 = arith.muli %c0_i32_129, %c8_i32_130 : i32
      %204 = tpu.assume_multiple %203, 8 : i32
      %205 = arith.index_cast %204 : i32 to index
      %c0_131 = arith.constant 0 : index
      %206 = vector.load %arg5[%205, %c0_131] : memref<8x128xf32, #tpu.memory_space<vmem>>, vector<8x128xf32>
      %207 = vector.broadcast %197 : vector<1x128xf32> to vector<8x128xf32>
      %208 = arith.mulf %206, %207 : vector<8x128xf32>
      %209 = vector.broadcast %200 : vector<1x128xf32> to vector<8x128xf32>
      %210 = arith.addf %208, %209 : vector<8x128xf32>
      %cst_132 = arith.constant 0.000000e+00 : f32
      %211 = vector.broadcast %cst_132 : f32 to vector<8x128xf32>
      %212 = arith.cmpf ogt, %210, %211 : vector<8x128xf32>
      %cst_133 = arith.constant 2.000000e-01 : f32
      %213 = vector.broadcast %cst_133 : f32 to vector<8x128xf32>
      %214 = arith.mulf %213, %210 : vector<8x128xf32>
      %215 = arith.select %212, %210, %214 : vector<8x128xi1>, vector<8x128xf32>
      %cst_134 = arith.constant dense<0.000000e+00> : vector<8x128xf32>
      %216 = tpu.matmul %215, %201, %cst_134 {dimension_numbers = #tpu.dot_dimension_numbers<[1], [0], [0], [1], [0, 0, 1, 1], [], []>} : vector<8x128xf32>, vector<128x128xf32>, vector<8x128xf32> -> vector<8x128xf32>
      %217 = vector.broadcast %202 : vector<1x128xf32> to vector<8x128xf32>
      %218 = arith.addf %216, %217 : vector<8x128xf32>
      %219 = math.absf %218 : vector<8x128xf32>
      %cst_135 = arith.constant 0.000000e+00 : f32
      %220 = vector.broadcast %cst_135 : f32 to vector<8x128xf32>
      %221 = arith.subf %220, %219 : vector<8x128xf32>
      %222 = math.exp %221 : vector<8x128xf32>
      %cst_136 = arith.constant 0.000000e+00 : f32
      %223 = vector.broadcast %cst_136 : f32 to vector<8x128xf32>
      %224 = arith.cmpf oge, %218, %223 : vector<8x128xf32>
      %cst_137 = arith.constant 1.000000e+00 : f32
      %225 = vector.broadcast %cst_137 : f32 to vector<8x128xf32>
      %226 = arith.select %224, %225, %222 : vector<8x128xi1>, vector<8x128xf32>
      %cst_138 = arith.constant 1.000000e+00 : f32
      %227 = vector.broadcast %cst_138 : f32 to vector<8x128xf32>
      %228 = arith.addf %227, %222 : vector<8x128xf32>
      %229 = arith.divf %226, %228 : vector<8x128xf32>
      %230 = vector.extract_strided_slice %229 {offsets = [0, 0], sizes = [8, 4], strides = [1, 1]} : vector<8x128xf32> to vector<8x4xf32>
      %231 = arith.index_cast %204 : i32 to index
      %c0_139 = arith.constant 0 : index
      %232 = vector.load %arg4[%231, %c0_139] : memref<8x4xf32, #tpu.memory_space<vmem>>, vector<8x4xf32>
      tpu.vector_store %arg4[%231, %c0_139], %230 {strides = array<i32>} : memref<8x4xf32, #tpu.memory_space<vmem>>, vector<8x4xf32>,
      %c1_i32_140 = arith.constant 1 : i32
    } else {
    }
    return
  }
  func.func @transform_0(%arg0: i32) -> (i32, i32) {
    %c0_i32 = arith.constant 0 : i32
    %c0_i32_0 = arith.constant 0 : i32
    return %arg0, %c0_i32 : i32, i32
  }
  func.func @transform_1(%arg0: i32) -> (i32, i32) {
    %c0_i32 = arith.constant 0 : i32
    %c0_i32_0 = arith.constant 0 : i32
    %c0_i32_1 = arith.constant 0 : i32
    return %c0_i32, %c0_i32_0 : i32, i32
  }
  func.func @transform_2(%arg0: i32) -> (i32, i32) {
    %c0_i32 = arith.constant 0 : i32
    %c0_i32_0 = arith.constant 0 : i32
    %c0_i32_1 = arith.constant 0 : i32
    return %c0_i32, %c0_i32_0 : i32, i32
  }
  func.func @transform_3(%arg0: i32) -> (i32, i32) {
    %c0_i32 = arith.constant 0 : i32
    %c0_i32_0 = arith.constant 0 : i32
    %c0_i32_1 = arith.constant 0 : i32
    return %c0_i32, %c0_i32_0 : i32, i32
  }
}

</mosaic_0001>

<bundles_post_ra>
// kernel: tpu_custom_call.1
= control target key start
LH: loop header
LB: loop body
LE: loop exit
PB: predicated region body
PF: predicated region fallthrough
CT: control target
= control target key end

     0   :  { %8 = vsyncpa [#allocation6], 0  ;;  %s2524_s0 = inlined_call_operand.hbm [shape: f32[8,256], index: 0, kind: input, shape index: {}]   ;;  %s2525_s1 = inlined_call_operand.hbm [shape: f32[896,128], index: 1, kind: input, shape index: {}]   ;;  %s2526_s2 = inlined_call_operand.hbm [shape: f32[16,128], index: 2, kind: input, shape index: {}]   ;;  %s2527_s3 = inlined_call_operand.vmem [shape: f32[8,4], index: 3, kind: output, shape index: {}]  }
   0x1   :  { %9 = vsyncpa [#allocation8], 0  ;;  %s2085_s12 = smov [#allocation7]  }
   0x2   :  { %s25_s13 = sshll.u32 %s2085_s12, 4  ;;  %s26_s13 = int_to_ptr.vmem [resolvable:$true] %s25_s13 }
   0x3   :  { %s2029_s14 = scalar_lea.vmem %s26_s13, 14336  ;;  %p2034_p1 = scmp.lt.s32.totalorder %s26_s13, %s26_s13 }
   0x4   :  { %p2030_p0 = scmp.ne.s32.totalorder %s26_s13, %s2029_s14  ;;  %p2035_p2 = scmp.lt.s32.totalorder %s2029_s14, %s2029_s14 }
   0x6   :  { %p2036_p3 = por %p2035_p2, %p2034_p1 }
   0x8   :  { %p2037_p4 = pnand %p2036_p3, %p2030_p0 }
   0xa   :  { %2040 = shalt.err (!%p2037_p4)
}
   0xb   :  { %s2086_s15 = smov 128   ;;  %s2087_s16 = smov 8  }
   0xc   :  { %31 = dma.hbm_to_vmem [thread:$0]  %s2525_s1, 14336, %s26_s13, [#allocation8], %s2086_s15, %s2086_s15, %s2087_s16  }
   0xd   :  { %s2088_s19 = smov [#allocation5]   ;;  %s2089_s21 = smov [#allocation9]  }
   0xe   :  { %s16_s20 = sshll.u32 %s2088_s19, 4  ;;  %s37_s22 = sshll.u32 %s2089_s21, 4  ;;  %s17_s20 = int_to_ptr.vmem [resolvable:$true] %s16_s20  ;;  %s38_s22 = int_to_ptr.vmem [resolvable:$true] %s37_s22 }
   0xf   :  { %s2049_s23 = scalar_lea.vmem %s17_s20, 256  ;;  %p2054_p6 = scmp.lt.s32.totalorder %s17_s20, %s17_s20 }
  0x10   :  { %p2050_p5 = scmp.ne.s32.totalorder %s17_s20, %s2049_s23  ;;  %p2055_p7 = scmp.lt.s32.totalorder %s2049_s23, %s2049_s23 }
  0x12   :  { %p2056_p8 = por %p2055_p7, %p2054_p6 }
  0x14   :  { %p2057_p9 = pnand %p2056_p8, %p2050_p5 }
  0x16   :  { %2060 = shalt.err (!%p2057_p9)
}
  0x17   :  { %19 = dma.hbm_to_vmem [thread:$0]  %s2524_s0, 256, %s17_s20, [#allocation6]  }
  0x18   :  { %s2069_s26 = scalar_lea.vmem %s38_s22, 256  ;;  %p2074_p11 = scmp.lt.s32.totalorder %s38_s22, %s38_s22 }
  0x19   :  { %p2070_p10 = scmp.ne.s32.totalorder %s38_s22, %s2069_s26  ;;  %p2075_p12 = scmp.lt.s32.totalorder %s2069_s26, %s2069_s26 }
  0x1b   :  { %p2076_p13 = por %p2075_p12, %p2074_p11 }
  0x1d   :  { %p2077_p0 = pnand %p2076_p13, %p2070_p10 }
  0x1f   :  { %2080 = shalt.err (!%p2077_p0)
}
  0x20   :  { %43 = dma.hbm_to_vmem [thread:$0]  %s2526_s2, 256, %s38_s22, [#allocation8], %s2086_s15, %s2086_s15, %s2087_s16  }
  0x21   :  { %2081 = dma.done.wait [#allocation6], 256  }
  0x22   :  { %2082 = vsyncadd [#allocation6], 4294967040 }
  0x23   :  { %2083 = dma.done.wait [#allocation8], 14592  }
  0x24   :  { %2084 = vsyncadd [#allocation8], 4294952704  ;;  %v2090_v0 = vmov 0.0   ;;  %v92_v1 = vld [vmem:[#allocation7 + $0xf8] sm:$0xff]  ;;  %v91_v3 = vld [vmem:[#allocation7 + $0xf0] sm:$0xff]  ;;  %vm2091_vm0 = vmmov 0  }
  0x25   :  { %1566 = vmatprep.subr.mxu1 %v2090_v0  ;;  %57 = vst [vmem:[#allocation3] sm:$0xf] %v2090_v0  ;;  %58 = vst [vmem:[#allocation4] sm:$0xf] %v2090_v0  ;;  %v76_v2 = vld [vmem:[#allocation7 + $0x78] sm:$0xff]  ;;  %1327 = vmatprep.subr.mxu0 %v92_v1  ;;  %v75_v4 = vld [vmem:[#allocation7 + $0x70] sm:$0xff] }
  0x26   :  { %1328 = vmatpush3.msra.mxu0 %v76_v2  ;;  %v90_v5 = vld [vmem:[#allocation7 + $0xe8] sm:$0xff]  ;;  %v89_v7 = vld [vmem:[#allocation7 + $0xe0] sm:$0xff]  ;;  %v88_v9 = vld [vmem:[#allocation7 + $0xd8] sm:$0xff]  ;;  %1598 = vmatprep.mubr.msk.f32.mxu1 %vm2091_vm0, %v2090_v0  ;;  %vm1314_vm6 = vcmask 31744  }
  0x27   :  { %1329 = vmatprep.subr.mxu0 %v91_v3  ;;  %v74_v6 = vld [vmem:[#allocation7 + $0x68] sm:$0xff]  ;;  %v73_v8 = vld [vmem:[#allocation7 + $0x60] sm:$0xff]  ;;  %v72_v10 = vld [vmem:[#allocation7 + $0x58] sm:$0xff] }
  0x28   :  { %1330 = vmatpush3.msra.mxu0 %v75_v4  ;;  %v87_v11 = vld [vmem:[#allocation7 + $0xd0] sm:$0xff]  ;;  %v86_v13 = vld [vmem:[#allocation7 + $0xc8] sm:$0xff]  ;;  %v60_v14 = vld [vmem:[#allocation5 + $0x8] sm:$0xff] }
  0x29   :  { %1331 = vmatprep.subr.mxu0 %v90_v5  ;;  %v71_v12 = vld [vmem:[#allocation7 + $0x50] sm:$0xff]  ;;  %v70_v15 = vld [vmem:[#allocation7 + $0x48] sm:$0xff]  ;;  %162 = vmatprep.mubr.f32.mxu0 %v60_v14  ;;  %v2124_v16 = vld [vmem:[#allocation7 + $0x378] sm:$0xff] }
  0x2a   :  { %1332 = vmatpush3.msra.mxu0 %v74_v6  ;;  %v85_v17 = vld [vmem:[#allocation7 + $0xc0] sm:$0xff]  ;;  %1567 = vmatpush3.msra.mxu1 %v2124_v16  ;;  %v84_v19 = vld [vmem:[#allocation7 + $0xb8] sm:$0xff]  ;;  %v83_v21 = vld [vmem:[#allocation7 + $0xb0] sm:$0xff] }
  0x2b   :  { %1333 = vmatprep.subr.mxu0 %v89_v7  ;;  %v69_v18 = vld [vmem:[#allocation7 + $0x40] sm:$0xff]  ;;  %1568 = vmatprep.subr.mxu1 %v2090_v0  ;;  %v68_v20 = vld [vmem:[#allocation7 + $0x38] sm:$0xff]  ;;  %v67_v22 = vld [vmem:[#allocation7 + $0x30] sm:$0xff] }
  0x2c   :  { %1334 = vmatpush3.msra.mxu0 %v73_v8  ;;  %v82_v23 = vld [vmem:[#allocation7 + $0xa8] sm:$0xff]  ;;  %v81_v25 = vld [vmem:[#allocation7 + $0xa0] sm:$0xff]  ;;  %v80_v27 = vld [vmem:[#allocation7 + $0x98] sm:$0xff] }
  0x2d   :  { %1335 = vmatprep.subr.mxu0 %v88_v9  ;;  %v66_v24 = vld [vmem:[#allocation7 + $0x28] sm:$0xff]  ;;  %v65_v26 = vld [vmem:[#allocation7 + $0x20] sm:$0xff]  ;;  %v64_v28 = vld [vmem:[#allocation7 + $0x18] sm:$0xff] }
  0x2e   :  { %1336 = vmatpush3.msra.mxu0 %v72_v10  ;;  %v79_v29 = vld [vmem:[#allocation7 + $0x90] sm:$0xff]  ;;  %v78_v31 = vld [vmem:[#allocation7 + $0x88] sm:$0xff]  ;;  %v77_v33 = vld [vmem:[#allocation7 + $0x80] sm:$0xff] }
  0x2f   :  { %1337 = vmatprep.subr.mxu0 %v87_v11  ;;  %v63_v30 = vld [vmem:[#allocation7 + $0x10] sm:$0xff]  ;;  %v62_v32 = vld [vmem:[#allocation7 + $0x8] sm:$0xff]  ;;  %v61_v34 = vld [vmem:[#allocation7] sm:$0xff] }
  0x30   :  { %1338 = vmatpush3.msra.mxu0 %v71_v12  ;;  %v59_v35 = vld [vmem:[#allocation5] sm:$0xff]  ;;  %v2136_v37 = vld [vmem:[#allocation7 + $0x368] sm:$0xff]  ;;  %v2142_v38 = vld [vmem:[#allocation7 + $0x360] sm:$0xff] }
  0x31   :  { %1339 = vmatprep.subr.mxu0 %v86_v13  ;;  %v2131_v36 = vld [vmem:[#allocation7 + $0x370] sm:$0xff]  ;;  %v2148_v39 = vld [vmem:[#allocation7 + $0x358] sm:$0xff]  ;;  %v2160_v41 = vld [vmem:[#allocation7 + $0x348] sm:$0xff] }
  0x32   :  { %1340 = vmatpush3.msra.mxu0 %v70_v15  ;;  %1569 = vmatpush3.msra.mxu1 %v2131_v36  ;;  %v2154_v40 = vld [vmem:[#allocation7 + $0x350] sm:$0xff]  ;;  %v2166_v42 = vld [vmem:[#allocation7 + $0x340] sm:$0xff]  ;;  %v2172_v43 = vld [vmem:[#allocation7 + $0x338] sm:$0xff] }
  0x33   :  { %1341 = vmatprep.subr.mxu0 %v85_v17  ;;  %1570 = vmatprep.subr.mxu1 %v2090_v0  ;;  %v2178_v44 = vld [vmem:[#allocation7 + $0x330] sm:$0xff]  ;;  %v2184_v45 = vld [vmem:[#allocation7 + $0x328] sm:$0xff]  ;;  %v2190_v46 = vld [vmem:[#allocation7 + $0x320] sm:$0xff] }
  0x34   :  { %1342 = vmatpush3.msra.mxu0 %v69_v18  ;;  %1571 = vmatpush3.msra.mxu1 %v2136_v37  ;;  %v2196_v47 = vld [vmem:[#allocation7 + $0x318] sm:$0xff]  ;;  %v2202_v48 = vld [vmem:[#allocation7 + $0x310] sm:$0xff]  ;;  %v2205_v49 = vld [vmem:[#allocation7 + $0x308] sm:$0xff] }
  0x35   :  { %1343 = vmatprep.subr.mxu0 %v84_v19  ;;  %1572 = vmatprep.subr.mxu1 %v2090_v0  ;;  %v2211_v50 = vld [vmem:[#allocation7 + $0x300] sm:$0xff]  ;;  %v168_v3 = vld [vmem:[#allocation3] sm:$0x1]  ;;  %v177_v6 = vld [vmem:[#allocation4] sm:$0x1] }
  0x36   :  { %1344 = vmatpush3.msra.mxu0 %v68_v20  ;;  %1573 = vmatpush3.msra.mxu1 %v2142_v38  ;;  %v1322_v52 = vld [vmem:[#allocation9] ss:$0 sm:$0xff]  ;;  %v378_v12 = vld [vmem:[#allocation7 + $0x178] sm:$0xff]  ;;  %v377_v13 = vld [vmem:[#allocation7 + $0x170] sm:$0xff] }
  0x37   :  { %1345 = vmatprep.subr.mxu0 %v83_v21  ;;  %1574 = vmatprep.subr.mxu1 %v2090_v0  ;;  %v376_v14 = vld [vmem:[#allocation7 + $0x168] sm:$0xff]  ;;  %v375_v15 = vld [vmem:[#allocation7 + $0x160] sm:$0xff]  ;;  %v374_v17 = vld [vmem:[#allocation7 + $0x158] sm:$0xff] }
  0x38   :  { %1346 = vmatpush3.msra.mxu0 %v67_v22  ;;  %1575 = vmatpush3.msra.mxu1 %v2148_v39  ;;  %v373_v18 = vld [vmem:[#allocation7 + $0x150] sm:$0xff]  ;;  %v372_v19 = vld [vmem:[#allocation7 + $0x148] sm:$0xff]  ;;  %v371_v20 = vld [vmem:[#allocation7 + $0x140] sm:$0xff] }
  0x39   :  { %1347 = vmatprep.subr.mxu0 %v82_v23  ;;  %1576 = vmatprep.subr.mxu1 %v2090_v0  ;;  %v370_v21 = vld [vmem:[#allocation7 + $0x138] sm:$0xff]  ;;  %v369_v22 = vld [vmem:[#allocation7 + $0x130] sm:$0xff]  ;;  %v368_v23 = vld [vmem:[#allocation7 + $0x128] sm:$0xff] }
  0x3a   :  { %1348 = vmatpush3.msra.mxu0 %v66_v24  ;;  %1577 = vmatpush3.msra.mxu1 %v2154_v40  ;;  %v367_v24 = vld [vmem:[#allocation7 + $0x120] sm:$0xff] }
  0x3b   :  { %1349 = vmatprep.subr.mxu0 %v81_v25  ;;  %1578 = vmatprep.subr.mxu1 %v2090_v0  ;;  %v366_v25 = vld [vmem:[#allocation7 + $0x118] sm:$0xff] }
  0x3c   :  { %1350 = vmatpush3.msra.mxu0 %v65_v26  ;;  %1579 = vmatpush3.msra.mxu1 %v2160_v41  ;;  %v365_v26 = vld [vmem:[#allocation7 + $0x110] sm:$0xff] }
  0x3d   :  { %1351 = vmatprep.subr.mxu0 %v80_v27  ;;  %1580 = vmatprep.subr.mxu1 %v2090_v0  ;;  %v364_v27 = vld [vmem:[#allocation7 + $0x108] sm:$0xff] }
  0x3e   :  { %1352 = vmatpush3.msra.mxu0 %v64_v28  ;;  %1581 = vmatpush3.msra.mxu1 %v2166_v42  ;;  %v363_v28 = vld [vmem:[#allocation7 + $0x100] sm:$0xff] }
  0x3f   :  { %1353 = vmatprep.subr.mxu0 %v79_v29  ;;  %1582 = vmatprep.subr.mxu1 %v2090_v0 }
  0x40   :  { %1354 = vmatpush3.msra.mxu0 %v63_v30  ;;  %1583 = vmatpush3.msra.mxu1 %v2172_v43 }
  0x41   :  { %1355 = vmatprep.subr.mxu0 %v78_v31  ;;  %1584 = vmatprep.subr.mxu1 %v2090_v0 }
  0x42   :  { %1356 = vmatpush3.msra.mxu0 %v62_v32  ;;  %1585 = vmatpush3.msra.mxu1 %v2178_v44 }
  0x43   :  { %1357 = vmatprep.subr.mxu0 %v77_v33  ;;  %1586 = vmatprep.subr.mxu1 %v2090_v0 }
  0x44   :  { %1358 = vmatpush3.msra.mxu0 %v61_v34  ;;  %1587 = vmatpush3.msra.mxu1 %v2184_v45 }
  0x45   :  { %163 = vmatmul.mubr.f32.vlgmr.msra.gmra.mxu0 %v59_v35  ;;  %1601 = vmatprep.subr.mxu0 %v2090_v0 }
  0x46   :  { %1602 = vmatpush3.msra.mxu0 %v2124_v16  ;;  %1588 = vmatprep.subr.mxu1 %v2090_v0 }
  0x47   :  { %1603 = vmatprep.subr.mxu0 %v2090_v0  ;;  %1589 = vmatpush3.msra.mxu1 %v2190_v46 }
  0x48   :  { %1604 = vmatpush3.msra.mxu0 %v2131_v36  ;;  %1590 = vmatprep.subr.mxu1 %v2090_v0 }
  0x49   :  { %1605 = vmatprep.subr.mxu0 %v2090_v0  ;;  %1591 = vmatpush3.msra.mxu1 %v2196_v47 }
  0x4a   :  { %1606 = vmatpush3.msra.mxu0 %v2136_v37  ;;  %1592 = vmatprep.subr.mxu1 %v2090_v0 }
  0x4b   :  { %1607 = vmatprep.subr.mxu0 %v2090_v0  ;;  %1593 = vmatpush3.msra.mxu1 %v2202_v48 }
  0x4c   :  { %1608 = vmatpush3.msra.mxu0 %v2142_v38  ;;  %1594 = vmatprep.subr.mxu1 %v2090_v0 }
  0x4d   :  { %1609 = vmatprep.subr.mxu0 %v2090_v0  ;;  %1595 = vmatpush3.msra.mxu1 %v2205_v49 }
  0x4e   :  { %1610 = vmatpush3.msra.mxu0 %v2148_v39  ;;  %1596 = vmatprep.subr.mxu1 %v2090_v0 }
  0x4f   :  { %1611 = vmatprep.subr.mxu0 %v2090_v0  ;;  %1597 = vmatpush3.msra.mxu1 %v2211_v50 }
  0x50   :  { %1612 = vmatpush3.msra.mxu0 %v2154_v40  ;;  %1633 = vmatprep.mubr.msk.f32.mxu0 %vm2091_vm0, %v2090_v0 }
  0x51   :  { %1613 = vmatprep.subr.mxu0 %v2090_v0  ;;  %1636 = vmatprep.subr.mxu1 %v2090_v0 }
  0x52   :  { %1614 = vmatpush3.msra.mxu0 %v2160_v41 }
  0x53   :  { %1615 = vmatprep.subr.mxu0 %v2090_v0 }
  0x54   :  { %1616 = vmatpush3.msra.mxu0 %v2166_v42 }
  0x55   :  { %1617 = vmatprep.subr.mxu0 %v2090_v0 }
  0x56   :  { %1618 = vmatpush3.msra.mxu0 %v2172_v43 }
  0x57   :  { %1619 = vmatprep.subr.mxu0 %v2090_v0 }
  0x58   :  { %1620 = vmatpush3.msra.mxu0 %v2178_v44 }
  0x59   :  { %1621 = vmatprep.subr.mxu0 %v2090_v0 }
  0x5a   :  { %1622 = vmatpush3.msra.mxu0 %v2184_v45 }
  0x5b   :  { %1623 = vmatprep.subr.mxu0 %v2090_v0 }
  0x5c   :  { %1624 = vmatpush3.msra.mxu0 %v2190_v46 }
  0x5d   :  { %1625 = vmatprep.subr.mxu0 %v2090_v0 }
  0x5e   :  { %1626 = vmatpush3.msra.mxu0 %v2196_v47 }
  0x5f   :  { %1627 = vmatprep.subr.mxu0 %v2090_v0 }
  0x60   :  { %1628 = vmatpush3.msra.mxu0 %v2202_v48 }
  0x61   :  { %1629 = vmatprep.subr.mxu0 %v2090_v0 }
  0x62   :  { %1630 = vmatpush3.msra.mxu0 %v2205_v49 }
  0x63   :  { %1631 = vmatprep.subr.mxu0 %v2090_v0 }
  0x64   :  { %1632 = vmatpush3.msra.mxu0 %v2211_v50 }
  0x65   :  { %1671 = vmatprep.subr.mxu0 %v2090_v0 }
 0x105   :  { %v1359_v51 = vpop.f32.mrf.mxu0 }
 0x107   :  { %v1360_v53 = vpop.f32.mrf.mxu0 }
 0x108   :  { %v1361_v54 = vadd.f32 %v1360_v53, %v1359_v51 }
 0x10a   :  { %v2225_v55 = vadd.f32 %v1361_v54, %v1322_v52  ;;  %v381_v54 = vlaneseq }
 0x10c   :  { %v169_v56 = vrot.slane %v2225_v55, 4  ;;  %v178_v57 = vmul.f32 %v2225_v55, %v2225_v55 }
 0x10e   :  { %v170_v58 = vadd.f32 %v169_v56, %v2225_v55  ;;  %v179_v59 = vrot.slane %v178_v57, 4  ;;  %v382_v56 = vshrl.u32 %v381_v54, 7  ;;  %v648_v54 = vld [vmem:[#allocation7 + $0x1b0] sm:$0xff] }
 0x110   :  { %v171_v60 = vrot.slane %v170_v58, 2  ;;  %v180_v61 = vadd.f32 %v179_v59, %v178_v57  ;;  %v356_v57 = vld [vmem:[#allocation9 + $0x1] sm:$0x1] }
 0x112   :  { %v172_v62 = vadd.f32 %v171_v60, %v170_v58  ;;  %v181_v63 = vrot.slane %v180_v61, 2  ;;  %v2283_v58 = vsub.s32 0, %v382_v56  ;;  %v647_v56 = vld [vmem:[#allocation7 + $0x1a8] sm:$0xff] }
 0x114   :  { %v173_v1 = vrot.slane %v172_v62, 1  ;;  %v182_v2 = vadd.f32 %v181_v63, %v180_v61  ;;  %v360_v61 = vld [vmem:[#allocation9 + $0x2] sm:$0x1] }
 0x116   :  { %v174_v4 = vadd.f32 %v173_v1, %v172_v62  ;;  %v183_v5 = vrot.slane %v182_v2, 1 }
 0x118   :  { %v175_v7 = vadd.f32 %v174_v4, %v168_v3  ;;  %v184_v8 = vadd.f32 %v183_v5, %v182_v2 }
 0x11a   :  { %176 = vst [vmem:[#allocation3] sm:$0x1] %v175_v7  ;;  %v185_v9 = vadd.f32 %v184_v8, %v177_v6 }
 0x11c   :  { %186 = vst [vmem:[#allocation4] sm:$0x1] %v185_v9 }
 0x121   :  { %v209_v10 = vld [vmem:[#allocation3] sm:$0x1] }
 0x122   :  { %1599 = vmatmul.mubr.f32.vlgmr.msra.gmra.mxu1 %v209_v10 }
 0x123   :  { %v280_v11 = vld [vmem:[#allocation4] sm:$0x1]  ;;  %1668 = vmatprep.mubr.msk.f32.mxu1 %vm2091_vm0, %v2090_v0  ;;  %1637 = vmatpush3.msra.mxu1 %v378_v12 }
 0x124   :  { %1634 = vmatmul.mubr.f32.vlgmr.msra.gmra.mxu0 %v280_v11  ;;  %1638 = vmatprep.subr.mxu1 %v2090_v0 }
 0x125   :  { %1672 = vmatpush3.msra.mxu0 %v2124_v16  ;;  %1703 = vmatprep.mubr.msk.f32.mxu0 %vm2091_vm0, %v2090_v0 }
 0x126   :  { %1673 = vmatprep.subr.mxu0 %v2090_v0  ;;  %1639 = vmatpush3.msra.mxu1 %v377_v13 }
 0x127   :  { %1674 = vmatpush3.msra.mxu0 %v2131_v36  ;;  %1640 = vmatprep.subr.mxu1 %v2090_v0 }
 0x128   :  { %1675 = vmatprep.subr.mxu0 %v2090_v0  ;;  %1641 = vmatpush3.msra.mxu1 %v376_v14 }
 0x129   :  { %1676 = vmatpush3.msra.mxu0 %v2136_v37  ;;  %1642 = vmatprep.subr.mxu1 %v2090_v0 }
 0x12a   :  { %1677 = vmatprep.subr.mxu0 %v2090_v0  ;;  %1643 = vmatpush3.msra.mxu1 %v375_v15 }
 0x12b   :  { %1678 = vmatpush3.msra.mxu0 %v2142_v38  ;;  %1644 = vmatprep.subr.mxu1 %v2090_v0 }
 0x12c   :  { %1679 = vmatprep.subr.mxu0 %v2090_v0  ;;  %1645 = vmatpush3.msra.mxu1 %v374_v17 }
 0x12d   :  { %1680 = vmatpush3.msra.mxu0 %v2148_v39  ;;  %1646 = vmatprep.subr.mxu1 %v2090_v0 }
 0x12e   :  { %1681 = vmatprep.subr.mxu0 %v2090_v0  ;;  %1647 = vmatpush3.msra.mxu1 %v373_v18 }
 0x12f   :  { %1682 = vmatpush3.msra.mxu0 %v2154_v40  ;;  %1648 = vmatprep.subr.mxu1 %v2090_v0 }
 0x130   :  { %1683 = vmatprep.subr.mxu0 %v2090_v0  ;;  %1649 = vmatpush3.msra.mxu1 %v372_v19 }
 0x131   :  { %1684 = vmatpush3.msra.mxu0 %v2160_v41  ;;  %1650 = vmatprep.subr.mxu1 %v2090_v0 }
 0x132   :  { %1685 = vmatprep.subr.mxu0 %v2090_v0  ;;  %1651 = vmatpush3.msra.mxu1 %v371_v20 }
 0x133   :  { %1686 = vmatpush3.msra.mxu0 %v2166_v42  ;;  %1652 = vmatprep.subr.mxu1 %v2090_v0 }
 0x134   :  { %1687 = vmatprep.subr.mxu0 %v2090_v0  ;;  %1653 = vmatpush3.msra.mxu1 %v370_v21  ;;  %v468_v21 = vld [vmem:[#allocation3 + $0x1] sm:$0x1] }
 0x135   :  { %1688 = vmatpush3.msra.mxu0 %v2172_v43  ;;  %1654 = vmatprep.subr.mxu1 %v2090_v0 }
 0x136   :  { %1689 = vmatprep.subr.mxu0 %v2090_v0  ;;  %1655 = vmatpush3.msra.mxu1 %v369_v22 }
 0x137   :  { %1690 = vmatpush3.msra.mxu0 %v2178_v44  ;;  %1656 = vmatprep.subr.mxu1 %v2090_v0 }
 0x138   :  { %1691 = vmatprep.subr.mxu0 %v2090_v0  ;;  %1657 = vmatpush3.msra.mxu1 %v368_v23 }
 0x139   :  { %1692 = vmatpush3.msra.mxu0 %v2184_v45  ;;  %1658 = vmatprep.subr.mxu1 %v2090_v0 }
 0x13a   :  { %1693 = vmatprep.subr.mxu0 %v2090_v0  ;;  %1659 = vmatpush3.msra.mxu1 %v367_v24  ;;  %v477_v24 = vld [vmem:[#allocation4 + $0x1] sm:$0x1] }
 0x13b   :  { %1694 = vmatpush3.msra.mxu0 %v2190_v46  ;;  %1660 = vmatprep.subr.mxu1 %v2090_v0 }
 0x13c   :  { %1695 = vmatprep.subr.mxu0 %v2090_v0  ;;  %1661 = vmatpush3.msra.mxu1 %v366_v25 }
 0x13d   :  { %1696 = vmatpush3.msra.mxu0 %v2196_v47  ;;  %1662 = vmatprep.subr.mxu1 %v2090_v0 }
 0x13e   :  { %1697 = vmatprep.subr.mxu0 %v2090_v0  ;;  %1663 = vmatpush3.msra.mxu1 %v365_v26 }
 0x13f   :  { %1698 = vmatpush3.msra.mxu0 %v2202_v48  ;;  %1664 = vmatprep.subr.mxu1 %v2090_v0 }
 0x140   :  { %1699 = vmatprep.subr.mxu0 %v2090_v0  ;;  %1665 = vmatpush3.msra.mxu1 %v364_v27 }
 0x141   :  { %1700 = vmatpush3.msra.mxu0 %v2205_v49  ;;  %1666 = vmatprep.subr.mxu1 %v2090_v0 }
 0x142   :  { %1701 = vmatprep.subr.mxu0 %v2090_v0  ;;  %1667 = vmatpush3.msra.mxu1 %v363_v28 }
 0x143   :  { %1702 = vmatpush3.msra.mxu0 %v2211_v50  ;;  %1706 = vmatprep.subr.mxu1 %v2090_v0 }
 0x144   :  { %1741 = vmatprep.subr.mxu0 %v2090_v0 }
 0x1e2   :  { %v276_v29 = vpop.f32.mrf.mxu1 }
 0x1e3   :  { %v351_v30 = vmul.f32 0.03125, %v276_v29 }
 0x1e4   :  { %v1600_v31 = vpop.f32.mrf.mxu1  ;;  %v347_v32 = vpop.f32.mrf.mxu0 }
 0x1e5   :  { %v353_v33 = vmul.f32 %v351_v30, %v351_v30  ;;  %v352_v34 = vmul.f32 0.03125, %v347_v32  ;;  %v656_v31 = vld [vmem:[#allocation7 + $0x1f0] sm:$0xff]  ;;  %v655_v32 = vld [vmem:[#allocation7 + $0x1e8] sm:$0xff] }
 0x1e6   :  { %v1635_v35 = vpop.f32.mrf.mxu0 }
 0x1e7   :  { %v354_v51 = vsub.f32 %v352_v34, %v353_v33  ;;  %v654_v33 = vld [vmem:[#allocation7 + $0x1e0] sm:$0xff]  ;;  %v653_v34 = vld [vmem:[#allocation7 + $0x1d8] sm:$0xff]  ;;  %v652_v35 = vld [vmem:[#allocation7 + $0x1d0] sm:$0xff] }
 0x1e9   :  { %v355_v52 = vmax.f32 %v354_v51, 0.0  ;;  %v651_v51 = vld [vmem:[#allocation7 + $0x1c8] sm:$0xff] }
 0x1eb   :  { %v357_v53 = vadd.f32 1e-05, %v355_v52  ;;  %v650_v52 = vld [vmem:[#allocation7 + $0x1c0] sm:$0xff] }
 0x1ed   :  { %1993 = vrsqrt.f32 %v357_v53  ;;  %v649_v53 = vld [vmem:[#allocation7 + $0x1b8] sm:$0xff] }
 0x1fa   :  { %v1994_v59 = vpop.eup %1993 }
 0x1fb   :  { %v359_v60 = vmul.f32 %v1994_v59, %v356_v57  ;;  %v646_v57 = vld [vmem:[#allocation7 + $0x1a0] sm:$0xff]  ;;  %v645_v59 = vld [vmem:[#allocation7 + $0x198] sm:$0xff] }
 0x1fd   :  { %v361_v62 = vmul.f32 %v359_v60, %v351_v30  ;;  %v384_v63 = vrot.slane %v359_v60, %v2283_v58  ;;  %v657_v30 = vld [vmem:[#allocation7 + $0x1f8] sm:$0xff]  ;;  %v644_v60 = vld [vmem:[#allocation7 + $0x190] sm:$0xff] }
 0x1ff   :  { %v362_v1 = vsub.f32 %v360_v61, %v361_v62  ;;  %v385_v2 = vmul.f32 %v384_v63, %v2225_v55  ;;  %v1323_v55 = vld [vmem:[#allocation9 + $0x3] ss:$0 sm:$0xff]  ;;  %v643_v61 = vld [vmem:[#allocation7 + $0x188] sm:$0xff] }
 0x200   :  { %v642_v62 = vld [vmem:[#allocation7 + $0x180] sm:$0xff] }
 0x201   :  { %v389_v3 = vrot.slane %v362_v1, %v2283_v58 }
 0x203   :  { %v390_v4 = vadd.f32 %v389_v3, %v385_v2 }
 0x205   :  { %vm391_vm1 = vcmp.gt.f32.partialorder %v390_v4, 0.0  ;;  %v392_v5 = vmul.f32 0.2, %v390_v4 }
 0x207   :  { %v393_v6 = vsel %vm391_vm1, %v390_v4, %v392_v5 }
 0x208   :  { %1669 = vmatmul.mubr.f32.vlgmr.msra.gmra.mxu1 %v393_v6 }
 0x209   :  { %1707 = vmatpush3.msra.mxu1 %v2124_v16  ;;  %1738 = vmatprep.mubr.msk.f32.mxu1 %vm2091_vm0, %v2090_v0 }
 0x20a   :  { %1708 = vmatprep.subr.mxu1 %v2090_v0 }
 0x20b   :  { %1709 = vmatpush3.msra.mxu1 %v2131_v36 }
 0x20c   :  { %1710 = vmatprep.subr.mxu1 %v2090_v0 }
 0x20d   :  { %1711 = vmatpush3.msra.mxu1 %v2136_v37 }
 0x20e   :  { %1712 = vmatprep.subr.mxu1 %v2090_v0 }
 0x20f   :  { %1713 = vmatpush3.msra.mxu1 %v2142_v38 }
 0x210   :  { %1714 = vmatprep.subr.mxu1 %v2090_v0 }
 0x211   :  { %1715 = vmatpush3.msra.mxu1 %v2148_v39 }
 0x212   :  { %1716 = vmatprep.subr.mxu1 %v2090_v0 }
 0x213   :  { %1717 = vmatpush3.msra.mxu1 %v2154_v40 }
 0x214   :  { %1718 = vmatprep.subr.mxu1 %v2090_v0 }
 0x215   :  { %1719 = vmatpush3.msra.mxu1 %v2160_v41 }
 0x216   :  { %1720 = vmatprep.subr.mxu1 %v2090_v0 }
 0x217   :  { %1721 = vmatpush3.msra.mxu1 %v2166_v42 }
 0x218   :  { %1722 = vmatprep.subr.mxu1 %v2090_v0 }
 0x219   :  { %1723 = vmatpush3.msra.mxu1 %v2172_v43 }
 0x21a   :  { %1724 = vmatprep.subr.mxu1 %v2090_v0 }
 0x21b   :  { %1725 = vmatpush3.msra.mxu1 %v2178_v44 }
 0x21c   :  { %1726 = vmatprep.subr.mxu1 %v2090_v0 }
 0x21d   :  { %1727 = vmatpush3.msra.mxu1 %v2184_v45 }
 0x21e   :  { %1728 = vmatprep.subr.mxu1 %v2090_v0 }
 0x21f   :  { %1729 = vmatpush3.msra.mxu1 %v2190_v46 }
 0x220   :  { %1730 = vmatprep.subr.mxu1 %v2090_v0 }
 0x221   :  { %1731 = vmatpush3.msra.mxu1 %v2196_v47 }
 0x222   :  { %1732 = vmatprep.subr.mxu1 %v2090_v0 }
 0x223   :  { %1733 = vmatpush3.msra.mxu1 %v2202_v48 }
 0x224   :  { %1734 = vmatprep.subr.mxu1 %v2090_v0 }
 0x225   :  { %1735 = vmatpush3.msra.mxu1 %v2205_v49 }
 0x226   :  { %1736 = vmatprep.subr.mxu1 %v2090_v0 }
 0x227   :  { %1737 = vmatpush3.msra.mxu1 %v2211_v50 }
 0x228   :  { %1776 = vmatprep.subr.mxu1 %v2090_v0 }
 0x2c8   :  { %v464_v7 = vpop.f32.mrf.mxu1 }
 0x2c9   :  { %v2322_v8 = vadd.f32 %v1323_v55, %v464_v7 }
 0x2ca   :  { %v1670_v9 = vpop.f32.mrf.mxu1 }
 0x2cb   :  { %v469_v10 = vrot.slane %v2322_v8, 4  ;;  %v478_v11 = vmul.f32 %v2322_v8, %v2322_v8 }
 0x2cd   :  { %v470_v12 = vadd.f32 %v469_v10, %v2322_v8  ;;  %v479_v13 = vrot.slane %v478_v11, 4  ;;  %v635_v10 = vld [vmem:[#allocation9 + $0x4] sm:$0x1] }
 0x2cf   :  { %v471_v14 = vrot.slane %v470_v12, 2  ;;  %v480_v15 = vadd.f32 %v479_v13, %v478_v11  ;;  %v639_v13 = vld [vmem:[#allocation9 + $0x5] sm:$0x1] }
 0x2d1   :  { %v472_v17 = vadd.f32 %v471_v14, %v470_v12  ;;  %v481_v18 = vrot.slane %v480_v15, 2 }
 0x2d3   :  { %v473_v19 = vrot.slane %v472_v17, 1  ;;  %v482_v20 = vadd.f32 %v481_v18, %v480_v15 }
 0x2d5   :  { %v474_v22 = vadd.f32 %v473_v19, %v472_v17  ;;  %v483_v23 = vrot.slane %v482_v20, 1 }
 0x2d7   :  { %v475_v25 = vadd.f32 %v474_v22, %v468_v21  ;;  %v484_v26 = vadd.f32 %v483_v23, %v482_v20 }
 0x2d9   :  { %476 = vst [vmem:[#allocation3 + $0x1] sm:$0x1] %v475_v25  ;;  %v485_v27 = vadd.f32 %v484_v26, %v477_v24 }
 0x2db   :  { %486 = vst [vmem:[#allocation4 + $0x1] sm:$0x1] %v485_v27 }
 0x2e0   :  { %v488_v28 = vld [vmem:[#allocation3 + $0x1] sm:$0x1] }
 0x2e1   :  { %1704 = vmatmul.mubr.f32.vlgmr.msra.gmra.mxu0 %v488_v28 }
 0x2e2   :  { %v559_v29 = vld [vmem:[#allocation4 + $0x1] sm:$0x1]  ;;  %1773 = vmatprep.mubr.msk.f32.mxu0 %vm2091_vm0, %v2090_v0  ;;  %1742 = vmatpush3.msra.mxu0 %v657_v30 }
 0x2e3   :  { %1739 = vmatmul.mubr.f32.vlgmr.msra.gmra.mxu1 %v559_v29  ;;  %1743 = vmatprep.subr.mxu0 %v2090_v0 }
 0x2e4   :  { %1777 = vmatpush3.msra.mxu1 %v2124_v16  ;;  %1808 = vmatprep.mubr.msk.f32.mxu1 %vm2091_vm0, %v2090_v0 }
 0x2e5   :  { %1778 = vmatprep.subr.mxu1 %v2090_v0  ;;  %1744 = vmatpush3.msra.mxu0 %v656_v31 }
 0x2e6   :  { %1779 = vmatpush3.msra.mxu1 %v2131_v36  ;;  %1745 = vmatprep.subr.mxu0 %v2090_v0 }
 0x2e7   :  { %1780 = vmatprep.subr.mxu1 %v2090_v0  ;;  %1746 = vmatpush3.msra.mxu0 %v655_v32 }
 0x2e8   :  { %1781 = vmatpush3.msra.mxu1 %v2136_v37  ;;  %1747 = vmatprep.subr.mxu0 %v2090_v0 }
 0x2e9   :  { %1782 = vmatprep.subr.mxu1 %v2090_v0  ;;  %1748 = vmatpush3.msra.mxu0 %v654_v33 }
 0x2ea   :  { %1783 = vmatpush3.msra.mxu1 %v2142_v38  ;;  %1749 = vmatprep.subr.mxu0 %v2090_v0 }
 0x2eb   :  { %1784 = vmatprep.subr.mxu1 %v2090_v0  ;;  %1750 = vmatpush3.msra.mxu0 %v653_v34 }
 0x2ec   :  { %1785 = vmatpush3.msra.mxu1 %v2148_v39  ;;  %1751 = vmatprep.subr.mxu0 %v2090_v0 }
 0x2ed   :  { %1786 = vmatprep.subr.mxu1 %v2090_v0  ;;  %1752 = vmatpush3.msra.mxu0 %v652_v35 }
 0x2ee   :  { %1787 = vmatpush3.msra.mxu1 %v2154_v40  ;;  %1753 = vmatprep.subr.mxu0 %v2090_v0 }
 0x2ef   :  { %1788 = vmatprep.subr.mxu1 %v2090_v0  ;;  %1754 = vmatpush3.msra.mxu0 %v651_v51  ;;  %v747_v51 = vld [vmem:[#allocation3 + $0x2] sm:$0x1] }
 0x2f0   :  { %1789 = vmatpush3.msra.mxu1 %v2160_v41  ;;  %1755 = vmatprep.subr.mxu0 %v2090_v0 }
 0x2f1   :  { %1790 = vmatprep.subr.mxu1 %v2090_v0  ;;  %1756 = vmatpush3.msra.mxu0 %v650_v52 }
 0x2f2   :  { %1791 = vmatpush3.msra.mxu1 %v2166_v42  ;;  %1757 = vmatprep.subr.mxu0 %v2090_v0 }
 0x2f3   :  { %1792 = vmatprep.subr.mxu1 %v2090_v0  ;;  %1758 = vmatpush3.msra.mxu0 %v649_v53 }
 0x2f4   :  { %1793 = vmatpush3.msra.mxu1 %v2172_v43  ;;  %1759 = vmatprep.subr.mxu0 %v2090_v0 }
 0x2f5   :  { %1794 = vmatprep.subr.mxu1 %v2090_v0  ;;  %1760 = vmatpush3.msra.mxu0 %v648_v54  ;;  %v756_v54 = vld [vmem:[#allocation4 + $0x2] sm:$0x1] }
 0x2f6   :  { %1795 = vmatpush3.msra.mxu1 %v2178_v44  ;;  %1761 = vmatprep.subr.mxu0 %v2090_v0 }
 0x2f7   :  { %1796 = vmatprep.subr.mxu1 %v2090_v0  ;;  %1762 = vmatpush3.msra.mxu0 %v647_v56 }
 0x2f8   :  { %1797 = vmatpush3.msra.mxu1 %v2184_v45  ;;  %1763 = vmatprep.subr.mxu0 %v2090_v0 }
 0x2f9   :  { %1798 = vmatprep.subr.mxu1 %v2090_v0  ;;  %1764 = vmatpush3.msra.mxu0 %v646_v57 }
 0x2fa   :  { %1799 = vmatpush3.msra.mxu1 %v2190_v46  ;;  %1765 = vmatprep.subr.mxu0 %v2090_v0 }
 0x2fb   :  { %1800 = vmatprep.subr.mxu1 %v2090_v0  ;;  %1766 = vmatpush3.msra.mxu0 %v645_v59 }
 0x2fc   :  { %1801 = vmatpush3.msra.mxu1 %v2196_v47  ;;  %1767 = vmatprep.subr.mxu0 %v2090_v0 }
 0x2fd   :  { %1802 = vmatprep.subr.mxu1 %v2090_v0  ;;  %1768 = vmatpush3.msra.mxu0 %v644_v60 }
 0x2fe   :  { %1803 = vmatpush3.msra.mxu1 %v2202_v48  ;;  %1769 = vmatprep.subr.mxu0 %v2090_v0 }
 0x2ff   :  { %1804 = vmatprep.subr.mxu1 %v2090_v0  ;;  %1770 = vmatpush3.msra.mxu0 %v643_v61 }
 0x300   :  { %1805 = vmatpush3.msra.mxu1 %v2205_v49  ;;  %1771 = vmatprep.subr.mxu0 %v2090_v0 }
 0x301   :  { %1806 = vmatprep.subr.mxu1 %v2090_v0  ;;  %1772 = vmatpush3.msra.mxu0 %v642_v62 }
 0x302   :  { %1807 = vmatpush3.msra.mxu1 %v2211_v50  ;;  %1811 = vmatprep.subr.mxu0 %v2090_v0 }
 0x303   :  { %1846 = vmatprep.subr.mxu1 %v2090_v0 }
 0x3a1   :  { %v555_v63 = vpop.f32.mrf.mxu0 }
 0x3a2   :  { %v630_v1 = vmul.f32 0.03125, %v555_v63 }
 0x3a3   :  { %v1705_v2 = vpop.f32.mrf.mxu0  ;;  %v626_v3 = vpop.f32.mrf.mxu1 }
 0x3a4   :  { %v632_v4 = vmul.f32 %v630_v1, %v630_v1  ;;  %v631_v5 = vmul.f32 0.03125, %v626_v3 }
 0x3a5   :  { %v1740_v6 = vpop.f32.mrf.mxu1 }
 0x3a6   :  { %v633_v55 = vsub.f32 %v631_v5, %v632_v4 }
 0x3a8   :  { %v634_v7 = vmax.f32 %v633_v55, 0.0 }
 0x3aa   :  { %v636_v9 = vadd.f32 1e-05, %v634_v7 }
 0x3ac   :  { %1995 = vrsqrt.f32 %v636_v9  ;;  %v914_v9 = vld [vmem:[#allocation9 + $0x7] sm:$0x1] }
 0x3b9   :  { %v1996_v11 = vpop.eup %1995 }
 0x3ba   :  { %v638_v12 = vmul.f32 %v1996_v11, %v635_v10 }
 0x3bc   :  { %v640_v14 = vmul.f32 %v638_v12, %v630_v1  ;;  %v663_v15 = vrot.slane %v638_v12, %v2283_v58  ;;  %v918_v12 = vld [vmem:[#allocation9 + $0x8] sm:$0x1] }
 0x3be   :  { %v641_v17 = vsub.f32 %v639_v13, %v640_v14  ;;  %v664_v18 = vmul.f32 %v663_v15, %v2322_v8  ;;  %v1324_v8 = vld [vmem:[#allocation9 + $0x6] ss:$0 sm:$0xff] }
 0x3c0   :  { %v668_v19 = vrot.slane %v641_v17, %v2283_v58 }
 0x3c2   :  { %v669_v20 = vadd.f32 %v668_v19, %v664_v18 }
 0x3c4   :  { %vm670_vm2 = vcmp.gt.f32.partialorder %v669_v20, 0.0  ;;  %v671_v21 = vmul.f32 0.2, %v669_v20 }
 0x3c6   :  { %v672_v22 = vsel %vm670_vm2, %v669_v20, %v671_v21 }
 0x3c7   :  { %1774 = vmatmul.mubr.f32.vlgmr.msra.gmra.mxu0 %v672_v22  ;;  %v2005_v22 = vld [vmem:[#allocation7 + $0x378] sm:$0xff] }
 0x3c8   :  { %1812 = vmatpush3.msra.mxu0 %v2124_v16  ;;  %1843 = vmatprep.mubr.msk.f32.mxu0 %vm2091_vm0, %v2090_v0 }
 0x3c9   :  { %1813 = vmatprep.subr.mxu0 %v2090_v0 }
 0x3ca   :  { %1814 = vmatpush3.msra.mxu0 %v2131_v36 }
 0x3cb   :  { %1815 = vmatprep.subr.mxu0 %v2090_v0 }
 0x3cc   :  { %1816 = vmatpush3.msra.mxu0 %v2136_v37 }
 0x3cd   :  { %1817 = vmatprep.subr.mxu0 %v2090_v0 }
 0x3ce   :  { %1818 = vmatpush3.msra.mxu0 %v2142_v38 }
 0x3cf   :  { %1819 = vmatprep.subr.mxu0 %v2090_v0 }
 0x3d0   :  { %1820 = vmatpush3.msra.mxu0 %v2148_v39 }
 0x3d1   :  { %1821 = vmatprep.subr.mxu0 %v2090_v0 }
 0x3d2   :  { %1822 = vmatpush3.msra.mxu0 %v2154_v40 }
 0x3d3   :  { %1823 = vmatprep.subr.mxu0 %v2090_v0 }
 0x3d4   :  { %1824 = vmatpush3.msra.mxu0 %v2160_v41 }
 0x3d5   :  { %1825 = vmatprep.subr.mxu0 %v2090_v0 }
 0x3d6   :  { %1826 = vmatpush3.msra.mxu0 %v2166_v42 }
 0x3d7   :  { %1827 = vmatprep.subr.mxu0 %v2090_v0 }
 0x3d8   :  { %1828 = vmatpush3.msra.mxu0 %v2172_v43 }
 0x3d9   :  { %1829 = vmatprep.subr.mxu0 %v2090_v0 }
 0x3da   :  { %1830 = vmatpush3.msra.mxu0 %v2178_v44 }
 0x3db   :  { %1831 = vmatprep.subr.mxu0 %v2090_v0 }
 0x3dc   :  { %1832 = vmatpush3.msra.mxu0 %v2184_v45 }
 0x3dd   :  { %1833 = vmatprep.subr.mxu0 %v2090_v0 }
 0x3de   :  { %1834 = vmatpush3.msra.mxu0 %v2190_v46 }
 0x3df   :  { %1835 = vmatprep.subr.mxu0 %v2090_v0 }
 0x3e0   :  { %1836 = vmatpush3.msra.mxu0 %v2196_v47 }
 0x3e1   :  { %1837 = vmatprep.subr.mxu0 %v2090_v0 }
 0x3e2   :  { %1838 = vmatpush3.msra.mxu0 %v2202_v48 }
 0x3e3   :  { %1839 = vmatprep.subr.mxu0 %v2090_v0 }
 0x3e4   :  { %1840 = vmatpush3.msra.mxu0 %v2205_v49 }
 0x3e5   :  { %1841 = vmatprep.subr.mxu0 %v2090_v0 }
 0x3e6   :  { %1842 = vmatpush3.msra.mxu0 %v2211_v50 }
 0x3e7   :  { %1881 = vmatprep.subr.mxu0 %v2090_v0 }
 0x487   :  { %v743_v23 = vpop.f32.mrf.mxu0 }
 0x488   :  { %v2417_v24 = vadd.f32 %v1324_v8, %v743_v23  ;;  %v2006_v8 = vld [vmem:[#allocation7 + $0x370] sm:$0xff]  ;;  %v2007_v23 = vld [vmem:[#allocation7 + $0x368] sm:$0xff] }
 0x489   :  { %v1775_v25 = vpop.f32.mrf.mxu0 }
 0x48a   :  { %v748_v26 = vrot.slane %v2417_v24, 4  ;;  %v757_v27 = vmul.f32 %v2417_v24, %v2417_v24  ;;  %v2009_v25 = vld [vmem:[#allocation7 + $0x358] sm:$0xff] }
 0x48c   :  { %v749_v28 = vadd.f32 %v748_v26, %v2417_v24  ;;  %v758_v29 = vrot.slane %v757_v27, 4  ;;  %v2010_v26 = vld [vmem:[#allocation7 + $0x350] sm:$0xff] }
 0x48e   :  { %v750_v30 = vrot.slane %v749_v28, 2  ;;  %v759_v31 = vadd.f32 %v758_v29, %v757_v27  ;;  %v2011_v27 = vld [vmem:[#allocation7 + $0x348] sm:$0xff]  ;;  %v2013_v29 = vld [vmem:[#allocation7 + $0x338] sm:$0xff] }
 0x490   :  { %v751_v32 = vadd.f32 %v750_v30, %v749_v28  ;;  %v760_v33 = vrot.slane %v759_v31, 2  ;;  %v2012_v28 = vld [vmem:[#allocation7 + $0x340] sm:$0xff]  ;;  %v2014_v30 = vld [vmem:[#allocation7 + $0x330] sm:$0xff] }
 0x492   :  { %v752_v34 = vrot.slane %v751_v32, 1  ;;  %v761_v35 = vadd.f32 %v760_v33, %v759_v31  ;;  %v2015_v31 = vld [vmem:[#allocation7 + $0x328] sm:$0xff]  ;;  %v2017_v33 = vld [vmem:[#allocation7 + $0x318] sm:$0xff] }
 0x494   :  { %v753_v52 = vadd.f32 %v752_v34, %v751_v32  ;;  %v762_v53 = vrot.slane %v761_v35, 1  ;;  %v2016_v32 = vld [vmem:[#allocation7 + $0x320] sm:$0xff]  ;;  %v2018_v34 = vld [vmem:[#allocation7 + $0x310] sm:$0xff] }
 0x496   :  { %v754_v56 = vadd.f32 %v753_v52, %v747_v51  ;;  %v763_v57 = vadd.f32 %v762_v53, %v761_v35  ;;  %v2019_v35 = vld [vmem:[#allocation7 + $0x308] sm:$0xff]  ;;  %v2020_v51 = vld [vmem:[#allocation7 + $0x300] sm:$0xff] }
 0x497   :  { %v1325_v52 = vld [vmem:[#allocation9 + $0x9] ss:$0 sm:$0xff] }
 0x498   :  { %755 = vst [vmem:[#allocation3 + $0x2] sm:$0x1] %v754_v56  ;;  %v764_v59 = vadd.f32 %v763_v57, %v756_v54 }
 0x49a   :  { %765 = vst [vmem:[#allocation4 + $0x2] sm:$0x1] %v764_v59 }
 0x49f   :  { %v767_v60 = vld [vmem:[#allocation3 + $0x2] sm:$0x1] }
 0x4a0   :  { %1809 = vmatmul.mubr.f32.vlgmr.msra.gmra.mxu1 %v767_v60 }
 0x4a1   :  { %v838_v61 = vld [vmem:[#allocation4 + $0x2] sm:$0x1]  ;;  %1878 = vmatprep.mubr.msk.f32.mxu1 %vm2091_vm0, %v2090_v0 }
 0x4a2   :  { %1844 = vmatmul.mubr.f32.vlgmr.msra.gmra.mxu0 %v838_v61 }
 0x4a3   :  { %1882 = vmatpush3.msra.mxu0 %v2124_v16  ;;  %1913 = vmatprep.mubr.msk.f32.mxu0 %vm2091_vm0, %v2090_v0  ;;  %v936_v16 = vld [vmem:[#allocation7 + $0x278] sm:$0xff] }
 0x4a4   :  { %1883 = vmatprep.subr.mxu0 %v2090_v0  ;;  %1847 = vmatpush3.msra.mxu1 %v936_v16 }
 0x4a5   :  { %1884 = vmatpush3.msra.mxu0 %v2131_v36  ;;  %1848 = vmatprep.subr.mxu1 %v2090_v0  ;;  %v935_v36 = vld [vmem:[#allocation7 + $0x270] sm:$0xff] }
 0x4a6   :  { %1885 = vmatprep.subr.mxu0 %v2090_v0  ;;  %1849 = vmatpush3.msra.mxu1 %v935_v36 }
 0x4a7   :  { %1886 = vmatpush3.msra.mxu0 %v2136_v37  ;;  %1850 = vmatprep.subr.mxu1 %v2090_v0  ;;  %v934_v37 = vld [vmem:[#allocation7 + $0x268] sm:$0xff] }
 0x4a8   :  { %1887 = vmatprep.subr.mxu0 %v2090_v0  ;;  %1851 = vmatpush3.msra.mxu1 %v934_v37 }
 0x4a9   :  { %1888 = vmatpush3.msra.mxu0 %v2142_v38  ;;  %v933_v38 = vld [vmem:[#allocation7 + $0x260] sm:$0xff]  ;;  %1852 = vmatprep.subr.mxu1 %v2090_v0 }
 0x4aa   :  { %1889 = vmatprep.subr.mxu0 %v2090_v0  ;;  %1853 = vmatpush3.msra.mxu1 %v933_v38 }
 0x4ab   :  { %1890 = vmatpush3.msra.mxu0 %v2148_v39  ;;  %v932_v39 = vld [vmem:[#allocation7 + $0x258] sm:$0xff]  ;;  %1854 = vmatprep.subr.mxu1 %v2090_v0 }
 0x4ac   :  { %1891 = vmatprep.subr.mxu0 %v2090_v0  ;;  %1855 = vmatpush3.msra.mxu1 %v932_v39 }
 0x4ad   :  { %1892 = vmatpush3.msra.mxu0 %v2154_v40  ;;  %v931_v40 = vld [vmem:[#allocation7 + $0x250] sm:$0xff]  ;;  %1856 = vmatprep.subr.mxu1 %v2090_v0 }
 0x4ae   :  { %1893 = vmatprep.subr.mxu0 %v2090_v0  ;;  %1857 = vmatpush3.msra.mxu1 %v931_v40 }
 0x4af   :  { %1894 = vmatpush3.msra.mxu0 %v2160_v41  ;;  %v930_v41 = vld [vmem:[#allocation7 + $0x248] sm:$0xff]  ;;  %1858 = vmatprep.subr.mxu1 %v2090_v0 }
 0x4b0   :  { %1895 = vmatprep.subr.mxu0 %v2090_v0  ;;  %1859 = vmatpush3.msra.mxu1 %v930_v41  ;;  %v1026_v41 = vld [vmem:[#allocation3 + $0x3] sm:$0x1] }
 0x4b1   :  { %1896 = vmatpush3.msra.mxu0 %v2166_v42  ;;  %v929_v42 = vld [vmem:[#allocation7 + $0x240] sm:$0xff]  ;;  %1860 = vmatprep.subr.mxu1 %v2090_v0 }
 0x4b2   :  { %1897 = vmatprep.subr.mxu0 %v2090_v0  ;;  %1861 = vmatpush3.msra.mxu1 %v929_v42 }
 0x4b3   :  { %1898 = vmatpush3.msra.mxu0 %v2172_v43  ;;  %v928_v43 = vld [vmem:[#allocation7 + $0x238] sm:$0xff]  ;;  %1862 = vmatprep.subr.mxu1 %v2090_v0 }
 0x4b4   :  { %1899 = vmatprep.subr.mxu0 %v2090_v0  ;;  %1863 = vmatpush3.msra.mxu1 %v928_v43 }
 0x4b5   :  { %1900 = vmatpush3.msra.mxu0 %v2178_v44  ;;  %v927_v44 = vld [vmem:[#allocation7 + $0x230] sm:$0xff]  ;;  %1864 = vmatprep.subr.mxu1 %v2090_v0 }
 0x4b6   :  { %1901 = vmatprep.subr.mxu0 %v2090_v0  ;;  %1865 = vmatpush3.msra.mxu1 %v927_v44  ;;  %v1035_v44 = vld [vmem:[#allocation4 + $0x3] sm:$0x1] }
 0x4b7   :  { %1902 = vmatpush3.msra.mxu0 %v2184_v45  ;;  %v926_v45 = vld [vmem:[#allocation7 + $0x228] sm:$0xff]  ;;  %1866 = vmatprep.subr.mxu1 %v2090_v0 }
 0x4b8   :  { %1903 = vmatprep.subr.mxu0 %v2090_v0  ;;  %1867 = vmatpush3.msra.mxu1 %v926_v45 }
 0x4b9   :  { %1904 = vmatpush3.msra.mxu0 %v2190_v46  ;;  %v925_v46 = vld [vmem:[#allocation7 + $0x220] sm:$0xff]  ;;  %1868 = vmatprep.subr.mxu1 %v2090_v0 }
 0x4ba   :  { %1905 = vmatprep.subr.mxu0 %v2090_v0  ;;  %1869 = vmatpush3.msra.mxu1 %v925_v46 }
 0x4bb   :  { %1906 = vmatpush3.msra.mxu0 %v2196_v47  ;;  %v924_v47 = vld [vmem:[#allocation7 + $0x218] sm:$0xff]  ;;  %1870 = vmatprep.subr.mxu1 %v2090_v0 }
 0x4bc   :  { %1907 = vmatprep.subr.mxu0 %v2090_v0  ;;  %1871 = vmatpush3.msra.mxu1 %v924_v47 }
 0x4bd   :  { %1908 = vmatpush3.msra.mxu0 %v2202_v48  ;;  %v923_v48 = vld [vmem:[#allocation7 + $0x210] sm:$0xff]  ;;  %1872 = vmatprep.subr.mxu1 %v2090_v0 }
 0x4be   :  { %1909 = vmatprep.subr.mxu0 %v2090_v0  ;;  %1873 = vmatpush3.msra.mxu1 %v923_v48 }
 0x4bf   :  { %1910 = vmatpush3.msra.mxu0 %v2205_v49  ;;  %v922_v49 = vld [vmem:[#allocation7 + $0x208] sm:$0xff]  ;;  %1874 = vmatprep.subr.mxu1 %v2090_v0 }
 0x4c0   :  { %1911 = vmatprep.subr.mxu0 %v2090_v0  ;;  %1875 = vmatpush3.msra.mxu1 %v922_v49 }
 0x4c1   :  { %1912 = vmatpush3.msra.mxu0 %v2211_v50  ;;  %v921_v50 = vld [vmem:[#allocation7 + $0x200] sm:$0xff]  ;;  %1876 = vmatprep.subr.mxu1 %v2090_v0 }
 0x4c2   :  { %1951 = vmatprep.subr.mxu0 %v2090_v0  ;;  %1877 = vmatpush3.msra.mxu1 %v921_v50  ;;  %v1215_v50 = vld [vmem:[#allocation7 + $0x2f8] sm:$0xff] }
 0x4c3   :  { %1916 = vmatprep.subr.mxu1 %v2090_v0 }
 0x560   :  { %v834_v62 = vpop.f32.mrf.mxu1 }
 0x561   :  { %v909_v63 = vmul.f32 0.03125, %v834_v62  ;;  %v1214_v62 = vld [vmem:[#allocation7 + $0x2f0] sm:$0xff] }
 0x562   :  { %v1810_v1 = vpop.f32.mrf.mxu1  ;;  %v905_v2 = vpop.f32.mrf.mxu0 }
 0x563   :  { %v911_v3 = vmul.f32 %v909_v63, %v909_v63  ;;  %v910_v4 = vmul.f32 0.03125, %v905_v2  ;;  %v1212_v1 = vld [vmem:[#allocation7 + $0x2e0] sm:$0xff]  ;;  %v1211_v2 = vld [vmem:[#allocation7 + $0x2d8] sm:$0xff] }
 0x564   :  { %v1845_v5 = vpop.f32.mrf.mxu0 }
 0x565   :  { %v912_v6 = vsub.f32 %v910_v4, %v911_v3  ;;  %v1210_v3 = vld [vmem:[#allocation7 + $0x2d0] sm:$0xff]  ;;  %v1209_v4 = vld [vmem:[#allocation7 + $0x2c8] sm:$0xff]  ;;  %v1208_v5 = vld [vmem:[#allocation7 + $0x2c0] sm:$0xff] }
 0x567   :  { %v913_v55 = vmax.f32 %v912_v6, 0.0  ;;  %v1207_v6 = vld [vmem:[#allocation7 + $0x2b8] sm:$0xff] }
 0x569   :  { %v915_v7 = vadd.f32 1e-05, %v913_v55  ;;  %v1206_v55 = vld [vmem:[#allocation7 + $0x2b0] sm:$0xff] }
 0x56b   :  { %1997 = vrsqrt.f32 %v915_v7  ;;  %v1205_v7 = vld [vmem:[#allocation7 + $0x2a8] sm:$0xff] }
 0x578   :  { %v1998_v10 = vpop.eup %1997 }
 0x579   :  { %v917_v11 = vmul.f32 %v1998_v10, %v914_v9  ;;  %v1204_v9 = vld [vmem:[#allocation7 + $0x2a0] sm:$0xff]  ;;  %v1203_v10 = vld [vmem:[#allocation7 + $0x298] sm:$0xff] }
 0x57b   :  { %v919_v13 = vmul.f32 %v917_v11, %v909_v63  ;;  %v942_v14 = vrot.slane %v917_v11, %v2283_v58  ;;  %v1213_v63 = vld [vmem:[#allocation7 + $0x2e8] sm:$0xff]  ;;  %v1202_v11 = vld [vmem:[#allocation7 + $0x290] sm:$0xff] }
 0x57d   :  { %v920_v15 = vsub.f32 %v918_v12, %v919_v13  ;;  %v943_v17 = vmul.f32 %v942_v14, %v2417_v24  ;;  %v2008_v24 = vld [vmem:[#allocation7 + $0x360] sm:$0xff]  ;;  %v1201_v12 = vld [vmem:[#allocation7 + $0x288] sm:$0xff] }
 0x57e   :  { %v1200_v13 = vld [vmem:[#allocation7 + $0x280] sm:$0xff] }
 0x57f   :  { %v947_v18 = vrot.slane %v920_v15, %v2283_v58 }
 0x581   :  { %v948_v19 = vadd.f32 %v947_v18, %v943_v17 }
 0x583   :  { %vm949_vm3 = vcmp.gt.f32.partialorder %v948_v19, 0.0  ;;  %v950_v20 = vmul.f32 0.2, %v948_v19 }
 0x585   :  { %v951_v21 = vsel %vm949_vm3, %v948_v19, %v950_v20 }
 0x586   :  { %1879 = vmatmul.mubr.f32.vlgmr.msra.gmra.mxu1 %v951_v21 }
 0x587   :  { %1917 = vmatpush3.msra.mxu1 %v2005_v22  ;;  %1948 = vmatprep.mubr.msk.f32.mxu1 %vm2091_vm0, %v2090_v0 }
 0x588   :  { %1918 = vmatprep.subr.mxu1 %v2090_v0 }
 0x589   :  { %1919 = vmatpush3.msra.mxu1 %v2006_v8 }
 0x58a   :  { %1920 = vmatprep.subr.mxu1 %v2090_v0 }
 0x58b   :  { %1921 = vmatpush3.msra.mxu1 %v2007_v23 }
 0x58c   :  { %1922 = vmatprep.subr.mxu1 %v2090_v0 }
 0x58d   :  { %1923 = vmatpush3.msra.mxu1 %v2008_v24  ;;  %v1193_v24 = vld [vmem:[#allocation9 + $0xa] sm:$0x1] }
 0x58e   :  { %1924 = vmatprep.subr.mxu1 %v2090_v0 }
 0x58f   :  { %1925 = vmatpush3.msra.mxu1 %v2009_v25 }
 0x590   :  { %1926 = vmatprep.subr.mxu1 %v2090_v0 }
 0x591   :  { %1927 = vmatpush3.msra.mxu1 %v2010_v26 }
 0x592   :  { %1928 = vmatprep.subr.mxu1 %v2090_v0 }
 0x593   :  { %1929 = vmatpush3.msra.mxu1 %v2011_v27  ;;  %v1197_v27 = vld [vmem:[#allocation9 + $0xb] sm:$0x1] }
 0x594   :  { %1930 = vmatprep.subr.mxu1 %v2090_v0 }
 0x595   :  { %1931 = vmatpush3.msra.mxu1 %v2012_v28 }
 0x596   :  { %1932 = vmatprep.subr.mxu1 %v2090_v0 }
 0x597   :  { %1933 = vmatpush3.msra.mxu1 %v2013_v29 }
 0x598   :  { %1934 = vmatprep.subr.mxu1 %v2090_v0 }
 0x599   :  { %1935 = vmatpush3.msra.mxu1 %v2014_v30 }
 0x59a   :  { %1936 = vmatprep.subr.mxu1 %v2090_v0 }
 0x59b   :  { %1937 = vmatpush3.msra.mxu1 %v2015_v31 }
 0x59c   :  { %1938 = vmatprep.subr.mxu1 %v2090_v0 }
 0x59d   :  { %1939 = vmatpush3.msra.mxu1 %v2016_v32 }
 0x59e   :  { %1940 = vmatprep.subr.mxu1 %v2090_v0 }
 0x59f   :  { %1941 = vmatpush3.msra.mxu1 %v2017_v33 }
 0x5a0   :  { %1942 = vmatprep.subr.mxu1 %v2090_v0 }
 0x5a1   :  { %1943 = vmatpush3.msra.mxu1 %v2018_v34 }
 0x5a2   :  { %1944 = vmatprep.subr.mxu1 %v2090_v0 }
 0x5a3   :  { %1945 = vmatpush3.msra.mxu1 %v2019_v35  ;;  %v1326_v35 = vld [vmem:[#allocation9 + $0xc] ss:$0 sm:$0xff] }
 0x5a4   :  { %1946 = vmatprep.subr.mxu1 %v2090_v0 }
 0x5a5   :  { %1947 = vmatpush3.msra.mxu1 %v2020_v51 }
 0x646   :  { %v1022_v53 = vpop.f32.mrf.mxu1 }
 0x647   :  { %v2495_v54 = vadd.f32 %v1325_v52, %v1022_v53 }
 0x648   :  { %v1880_v56 = vpop.f32.mrf.mxu1 }
 0x649   :  { %v1027_v57 = vrot.slane %v2495_v54, 4  ;;  %v1036_v59 = vmul.f32 %v2495_v54, %v2495_v54 }
 0x64b   :  { %v1028_v60 = vadd.f32 %v1027_v57, %v2495_v54  ;;  %v1037_v61 = vrot.slane %v1036_v59, 4 }
 0x64d   :  { %v1029_v16 = vrot.slane %v1028_v60, 2  ;;  %v1038_v36 = vadd.f32 %v1037_v61, %v1036_v59 }
 0x64f   :  { %v1030_v37 = vadd.f32 %v1029_v16, %v1028_v60  ;;  %v1039_v38 = vrot.slane %v1038_v36, 2 }
 0x651   :  { %v1031_v39 = vrot.slane %v1030_v37, 1  ;;  %v1040_v40 = vadd.f32 %v1039_v38, %v1038_v36 }
 0x653   :  { %v1032_v42 = vadd.f32 %v1031_v39, %v1030_v37  ;;  %v1041_v43 = vrot.slane %v1040_v40, 1 }
 0x655   :  { %v1033_v45 = vadd.f32 %v1032_v42, %v1026_v41  ;;  %v1042_v46 = vadd.f32 %v1041_v43, %v1040_v40 }
 0x657   :  { %1034 = vst [vmem:[#allocation3 + $0x3] sm:$0x1] %v1033_v45  ;;  %v1043_v47 = vadd.f32 %v1042_v46, %v1035_v44 }
 0x659   :  { %1044 = vst [vmem:[#allocation4 + $0x3] sm:$0x1] %v1043_v47 }
 0x65e   :  { %v1046_v48 = vld [vmem:[#allocation3 + $0x3] sm:$0x1] }
 0x65f   :  { %1914 = vmatmul.mubr.f32.vlgmr.msra.gmra.mxu0 %v1046_v48 }
 0x660   :  { %v1117_v49 = vld [vmem:[#allocation4 + $0x3] sm:$0x1]  ;;  %1983 = vmatprep.mubr.msk.f32.mxu0 %vm2091_vm0, %v2090_v0  ;;  %1952 = vmatpush3.msra.mxu0 %v1215_v50 }
 0x661   :  { %1949 = vmatmul.mubr.f32.vlgmr.msra.gmra.mxu1 %v1117_v49  ;;  %1953 = vmatprep.subr.mxu0 %v2090_v0 }
 0x662   :  { %1954 = vmatpush3.msra.mxu0 %v1214_v62 }
 0x663   :  { %1955 = vmatprep.subr.mxu0 %v2090_v0 }
 0x664   :  { %1956 = vmatpush3.msra.mxu0 %v1213_v63 }
 0x665   :  { %1957 = vmatprep.subr.mxu0 %v2090_v0 }
 0x666   :  { %1958 = vmatpush3.msra.mxu0 %v1212_v1 }
 0x667   :  { %1959 = vmatprep.subr.mxu0 %v2090_v0 }
 0x668   :  { %1960 = vmatpush3.msra.mxu0 %v1211_v2 }
 0x669   :  { %1961 = vmatprep.subr.mxu0 %v2090_v0 }
 0x66a   :  { %1962 = vmatpush3.msra.mxu0 %v1210_v3 }
 0x66b   :  { %1963 = vmatprep.subr.mxu0 %v2090_v0 }
 0x66c   :  { %1964 = vmatpush3.msra.mxu0 %v1209_v4 }
 0x66d   :  { %1965 = vmatprep.subr.mxu0 %v2090_v0 }
 0x66e   :  { %1966 = vmatpush3.msra.mxu0 %v1208_v5 }
 0x66f   :  { %1967 = vmatprep.subr.mxu0 %v2090_v0 }
 0x670   :  { %1968 = vmatpush3.msra.mxu0 %v1207_v6 }
 0x671   :  { %1969 = vmatprep.subr.mxu0 %v2090_v0 }
 0x672   :  { %1970 = vmatpush3.msra.mxu0 %v1206_v55 }
 0x673   :  { %1971 = vmatprep.subr.mxu0 %v2090_v0 }
 0x674   :  { %1972 = vmatpush3.msra.mxu0 %v1205_v7 }
 0x675   :  { %1973 = vmatprep.subr.mxu0 %v2090_v0 }
 0x676   :  { %1974 = vmatpush3.msra.mxu0 %v1204_v9 }
 0x677   :  { %1975 = vmatprep.subr.mxu0 %v2090_v0 }
 0x678   :  { %1976 = vmatpush3.msra.mxu0 %v1203_v10 }
 0x679   :  { %1977 = vmatprep.subr.mxu0 %v2090_v0 }
 0x67a   :  { %1978 = vmatpush3.msra.mxu0 %v1202_v11 }
 0x67b   :  { %1979 = vmatprep.subr.mxu0 %v2090_v0 }
 0x67c   :  { %1980 = vmatpush3.msra.mxu0 %v1201_v12 }
 0x67d   :  { %1981 = vmatprep.subr.mxu0 %v2090_v0 }
 0x67e   :  { %1982 = vmatpush3.msra.mxu0 %v1200_v13 }
 0x71f   :  { %v1113_v14 = vpop.f32.mrf.mxu0 }
 0x720   :  { %v1188_v15 = vmul.f32 0.03125, %v1113_v14 }
 0x721   :  { %v1915_v17 = vpop.f32.mrf.mxu0  ;;  %v1184_v18 = vpop.f32.mrf.mxu1 }
 0x722   :  { %v1190_v19 = vmul.f32 %v1188_v15, %v1188_v15  ;;  %v1189_v20 = vmul.f32 0.03125, %v1184_v18 }
 0x723   :  { %v1950_v21 = vpop.f32.mrf.mxu1 }
 0x724   :  { %v1191_v22 = vsub.f32 %v1189_v20, %v1190_v19 }
 0x726   :  { %v1192_v8 = vmax.f32 %v1191_v22, 0.0 }
 0x728   :  { %v1194_v23 = vadd.f32 1e-05, %v1192_v8 }
 0x72a   :  { %1999 = vrsqrt.f32 %v1194_v23 }
 0x737   :  { %v2000_v25 = vpop.eup %1999 }
 0x738   :  { %v1196_v26 = vmul.f32 %v2000_v25, %v1193_v24 }
 0x73a   :  { %v1198_v28 = vmul.f32 %v1196_v26, %v1188_v15  ;;  %v1221_v29 = vrot.slane %v1196_v26, %v2283_v58 }
 0x73c   :  { %v1199_v0 = vsub.f32 %v1197_v27, %v1198_v28  ;;  %v1222_v30 = vmul.f32 %v1221_v29, %v2495_v54 }
 0x73e   :  { %v1226_v31 = vrot.slane %v1199_v0, %v2283_v58 }
 0x740   :  { %v1227_v32 = vadd.f32 %v1226_v31, %v1222_v30 }
 0x742   :  { %vm1228_vm4 = vcmp.gt.f32.partialorder %v1227_v32, 0.0  ;;  %v1229_v33 = vmul.f32 0.2, %v1227_v32 }
 0x744   :  { %v1230_v34 = vsel %vm1228_vm4, %v1227_v32, %v1229_v33 }
 0x745   :  { %1984 = vmatmul.mubr.f32.vlgmr.msra.gmra.mxu0 %v1230_v34 }
 0x805   :  { %v1301_v51 = vpop.f32.mrf.mxu0 }
 0x806   :  { %v1302_v52 = vadd.f32 %v1326_v35, %v1301_v51 }
 0x807   :  { %v1985_v53 = vpop.f32.mrf.mxu0 }
 0x808   :  { %v1305_v56 = vand.u32 2147483647, %v1302_v52  ;;  %vm1309_vm5 = vcmp.ge.f32.partialorder %v1302_v52, 0.0 }
 0x80a   :  { %v1306_v57 = vsub.f32 0.0, %v1305_v56 }
 0x80c   :  { %v1307_v59 = vmul.f32 1.442695, %v1306_v57 }
 0x80e   :  { %2001 = vpow2.f32 %v1307_v59 }
 0x81b   :  { %v2002_v60 = vpop.eup %2001 }
 0x81c   :  { %v1311_v61 = vadd.f32 1.0, %v2002_v60  ;;  %v1310_v16 = vsel %vm1309_vm5, 1.0, %v2002_v60 }
 0x81e   :  { %2003 = vrcp.f32 %v1311_v61 }
 0x82b   :  { %v2004_v54 = vpop.eup %2003 }
 0x82c   :  { %v1313_v58 = vmul.f32 %v2004_v54, %v1310_v16 }
 0x82e   :  { %1315 = vst.msk [vmem:[%s2527_s3] sm:$0xff] %vm1314_vm6, %v1313_v58 }
 0x82f   :  { %1320 = vsyncpa [#allocation6], 1 }
 0x830   :  { %1321 = vsyncpa [#allocation8], 1 }

</bundles_post_ra>
